<compile_context>
chip_gen: v5e
topology: v5e:2x2
jax: 0.10.0
libtpu: 0.0.40
codegen_flags: <defaults>
</compile_context>

<pallas_src>
import jax
import jax.numpy as jnp
import numpy as np
from jax.experimental import pallas as pl
from jax.experimental.pallas import tpu as pltpu

EPS = 1e-5  # nn.BatchNorm1d default eps


# ---------------- Pallas kernel 1: fused, row-tiled Q/K/V projection ----------------
def _qkv_kernel(x_ref, w_ref, b_ref, q_ref, k_ref, v_ref):
    mid = q_ref.shape[1]
    out = v_ref.shape[1]
    qkv = (jnp.dot(x_ref[...], w_ref[...], preferred_element_type=jnp.float32)
           + b_ref[...])
    # separate outputs (review): avoids host-side minor-dim slices of (n, 48)
    q_ref[...] = qkv[:, :mid]
    k_ref[...] = qkv[:, mid:2 * mid]
    v_ref[...] = qkv[:, 2 * mid:2 * mid + out]


def qkv_proj(x, w, b, mid, out, *, tm):
    n, k = x.shape
    d = w.shape[1]
    assert n % tm == 0
    return pl.pallas_call(
        _qkv_kernel,
        grid=(n // tm,),
        in_specs=[
            pl.BlockSpec((tm, k), lambda i: (i, 0)),
            pl.BlockSpec((k, d), lambda i: (0, 0)),
            pl.BlockSpec((1, d), lambda i: (0, 0)),
        ],
        out_specs=(
            pl.BlockSpec((tm, mid), lambda i: (i, 0)),
            pl.BlockSpec((tm, mid), lambda i: (i, 0)),
            pl.BlockSpec((tm, out), lambda i: (i, 0)),
        ),
        out_shape=(
            jax.ShapeDtypeStruct((n, mid), jnp.float32),
            jax.ShapeDtypeStruct((n, mid), jnp.float32),
            jax.ShapeDtypeStruct((n, out), jnp.float32),
        ),
        compiler_params=pltpu.CompilerParams(dimension_semantics=("parallel",)),
    )(x, w, b)


# ------------- Pallas kernel 2: fused point-transformer attention -------------
def _attn_kernel(xkq_ref, xv_ref, pr_ref,
                 a1_ref, c1_ref, a2_ref, c2_ref,
                 sw_ref, tw_ref, w1_ref, b1_ref, w2e_ref, b2e_ref,
                 o_ref):
    out_c = o_ref.shape[1]            # out_planes
    ns = xv_ref.shape[1] // out_c     # nsample
    lanes = ns * out_c

    def dot(a, b):
        return jnp.dot(a, b, preferred_element_type=jnp.float32)

    # linear_p: (Linear(3,3)+BN folded) -> ReLU -> Linear(3,out), block-diagonal
    # over the nsample neighbors so everything stays lane-dense (tn, ns*C).
    t = jnp.maximum(dot(pr_ref[...], a1_ref[...]) + c1_ref[...], 0.0)
    prl = dot(t, a2_ref[...]) + c2_ref[...]                     # (tn, ns*out)

    # r_qk = (x_k - x_q) + p_r ; the x_q broadcast-subtract was folded into the
    # host-side gather (pure 0/1 copy -> off the MXU entirely).
    # (mid_planes == out_planes, so the einops sum-reduce is the identity.)
    r = xkq_ref[...] + prl                                      # (tn, ns*mid)

    # linear_w: BN(mid) folded affine -> ReLU -> (Linear+BN folded) -> ReLU
    #           -> (Linear(h,h) folded with the share-group expansion E)
    u = jnp.maximum(r * sw_ref[...] + tw_ref[...], 0.0)         # full-width VPU
    w1 = jnp.maximum(dot(u, w1_ref[...]) + b1_ref[...], 0.0)    # (tn, ns*h)
    z = dot(w1, w2e_ref[...]) + b2e_ref[...]                    # (tn, ns*out)

    # Neighbor-axis reductions, fully lane-dense: lanes of the same channel sit
    # at stride out_c, so circular rolls by multiples of out_c reduce over the
    # neighbors on the (otherwise idle) XLU slot.
    def neighbor_reduce(val, op):
        if ns & (ns - 1) == 0:                       # power-of-two tree
            red = val
            shift = out_c
            while shift < lanes:
                red = op(red, pltpu.roll(red, shift, axis=1))
                shift *= 2
            return red
        red = val                                    # generic fallback
        for k in range(1, ns):
            red = op(red, pltpu.roll(val, k * out_c, axis=1))
        return red

    m = neighbor_reduce(z, jnp.maximum)              # per-channel max over neighbors
    e = jnp.exp(z - m)
    denom = neighbor_reduce(e, jnp.add)              # softmax denominator
    numer = neighbor_reduce(e * (xv_ref[...] + prl), jnp.add)   # weighted neighbor sum

    # Exact divide (review correctness note); every lane group holds the same
    # reduced values, so the first out_c lanes are the final channels.
    o_ref[...] = numer[:, :out_c] / denom[:, :out_c]


def point_transformer_attention(xkq_flat, xv_flat, pr_flat, mats, *,
                                tn, out_planes):
    n_pad, d_k = xkq_flat.shape
    assert n_pad % tn == 0 and tn % 8 == 0
    d_v = xv_flat.shape[1]
    d_p = pr_flat.shape[1]

    in_specs = [
        pl.BlockSpec((tn, d_k), lambda i: (i, 0)),
        pl.BlockSpec((tn, d_v), lambda i: (i, 0)),
        pl.BlockSpec((tn, d_p), lambda i: (i, 0)),
    ] + [pl.BlockSpec(m.shape, lambda i: (0, 0)) for m in mats]

    # Explicit scoped-VMEM budget (review, v7x: 64 MiB physical / 32 MiB default
    # scoped).  Double-buffered row tiles + ~16 full-width f32 temporaries,
    # with a generous 4x margin, clamped well under the v7x physical ceiling.
    row_bytes = 4 * (d_k + d_v + d_p + out_planes)
    vmem_budget = 4 * (2 * tn * row_bytes + 16 * tn * 128 * 4)
    vmem_budget = int(min(max(vmem_budget, 16 << 20), 48 << 20))

    y = pl.pallas_call(
        _attn_kernel,
        grid=(n_pad // tn,),
        in_specs=in_specs,
        out_specs=pl.BlockSpec((tn, out_planes), lambda i: (i, 0)),
        out_shape=jax.ShapeDtypeStruct((n_pad, out_planes), jnp.float32),
        compiler_params=pltpu.CompilerParams(
            dimension_semantics=("parallel",),
            vmem_limit_bytes=vmem_budget),
    )(xkq_flat, xv_flat, pr_flat, *mats)
    return y


# ----------------------------- host-side glue -----------------------------
def knn_idx(p, batch_id, nsample):
    # TODO(synk): pointops.knn_query_and_group (data-dependent top-k + gather) has
    # no clean Pallas TPU equivalent at this scale; done in plain JAX as glue.
    d2 = jnp.sum((p[:, None, :] - p[None, :, :]) ** 2, axis=-1)
    same = batch_id[:, None] == batch_id[None, :]
    d2 = jnp.where(same, d2, jnp.inf)
    _, idx = jax.lax.top_k(-d2, nsample)
    return idx


def fold_and_pack_params(prm, ns, share_planes):
    """Fold inference-mode BatchNorms (exact) and build the block-diagonal / 0-1
    structured matrices that keep the attention kernel lane-dense.
    Every RHS stays <= 128 output lanes (v5e MXU tiles are 128 wide)."""
    f32 = jnp.float32
    mid = prm['wq'].shape[1]
    out = prm['wv'].shape[1]
    h = out // share_planes
    eye_ns = jnp.eye(ns, dtype=f32)

    # linear_p stage 1: Linear(3,3) + BN(3) folded
    sp = prm['gp'] / jnp.sqrt(prm['varp'] + EPS)
    ap = prm['wp1'] * sp[None, :]
    cp = sp * (prm['bp1'] - prm['mup']) + prm['bep']
    # linear_w: BN(mid) affine ; Linear(mid,h)+BN(h) folded ; Linear(h,h)
    s1 = prm['gw1'] / jnp.sqrt(prm['varw1'] + EPS)
    t1 = prm['bew1'] - s1 * prm['muw1']
    s2 = prm['gw2'] / jnp.sqrt(prm['varw2'] + EPS)
    ww1f = prm['ww1'] * s2[None, :]
    bw1f = s2 * (prm['bw1'] - prm['muw2']) + prm['bew2']

    A1 = jnp.kron(eye_ns, ap)                                  # (ns*3, ns*3)
    c1 = jnp.tile(cp, ns)[None, :]                             # (1, ns*3)
    A2 = jnp.kron(eye_ns, prm['wp2'])                          # (ns*3, ns*out)
    c2 = jnp.tile(prm['bp2'], ns)[None, :]                     # (1, ns*out)
    SW = jnp.tile(s1, ns)[None, :]                             # (1, ns*mid)
    TW = jnp.tile(t1, ns)[None, :]                             # (1, ns*mid)
    W1 = jnp.kron(eye_ns, ww1f)                                # (ns*mid, ns*h)
    b1 = jnp.tile(bw1f, ns)[None, :]                           # (1, ns*h)
    # Exact host fold (review): blockdiag(ww2) and the share-group expansion E
    # (lane j*out + g*h + a <- class (j, a)) collapse into one 16->128 matrix.
    E = jnp.kron(eye_ns, jnp.tile(jnp.eye(h, dtype=f32), (1, share_planes)))
    W2E = jnp.kron(eye_ns, prm['ww2']) @ E                     # (ns*h, ns*out)
    b2E = jnp.tile(prm['bw2'], ns)[None, :] @ E                # (1, ns*out)
    return (A1, c1, A2, c2, SW, TW, W1, b1, W2E, b2E)


def init_params(key, in_planes, out_planes, share_planes):
    mid = out_planes
    h = out_planes // share_planes
    ks = jax.random.split(key, 20)

    def w(k, shape, scale=0.2):
        return scale * jax.random.normal(k, shape, jnp.float32)

    def bnp(k, c):
        k1, k2, k3, k4 = jax.random.split(k, 4)
        gamma = 1.0 + 0.1 * jax.random.normal(k1, (c,), jnp.float32)
        beta = 0.1 * jax.random.normal(k2, (c,), jnp.float32)
        mu = 0.1 * jax.random.normal(k3, (c,), jnp.float32)
        var = 0.5 + 0.3 * jnp.abs(jax.random.normal(k4, (c,), jnp.float32))
        return gamma, beta, mu, var

    p = {}
    p['wq'] = w(ks[0], (in_planes, mid));        p['bq'] = w(ks[1], (mid,))
    p['wk'] = w(ks[2], (in_planes, mid));        p['bk'] = w(ks[3], (mid,))
    p['wv'] = w(ks[4], (in_planes, out_planes)); p['bv'] = w(ks[5], (out_planes,))
    p['wp1'] = w(ks[6], (3, 3));                 p['bp1'] = w(ks[7], (3,))
    p['gp'], p['bep'], p['mup'], p['varp'] = bnp(ks[8], 3)
    p['wp2'] = w(ks[9], (3, out_planes));        p['bp2'] = w(ks[10], (out_planes,))
    p['gw1'], p['bew1'], p['muw1'], p['varw1'] = bnp(ks[11], mid)
    p['ww1'] = w(ks[12], (mid, h));              p['bw1'] = w(ks[13], (h,))
    p['gw2'], p['bew2'], p['muw2'], p['varw2'] = bnp(ks[14], h)
    p['ww2'] = w(ks[15], (h, h));                p['bw2'] = w(ks[16], (h,))
    return p


def point_transformer_layer(p, x, o, prm, *, nsample, share_planes, tn=512):
    # tn: sweep 512-1024 (amortises the ~0.35 us per-grid-step overhead).
    # Per-tile VMEM is a few MiB even at tn=1024, so it fits on v5e/v6e (128 MiB)
    # and v7x (64 MiB). On v7x prefer a tn that gives an EVEN number of grid
    # steps so both TensorCores of the ("parallel",) axis get real work.
    n = x.shape[0]
    mid = prm['wq'].shape[1]
    out_planes = prm['wv'].shape[1]
    assert mid == out_planes            # module: mid_planes == out_planes // 1
    ns = nsample

    n_pad = ((n + tn - 1) // tn) * tn
    pad = n_pad - n
    x_p = jnp.pad(x, ((0, pad), (0, 0)))
    p_p = jnp.pad(p, ((0, pad), (0, 0)))

    # --- Q/K/V projections: one fused, row-tiled Pallas matmul, 3 outputs ---
    w_qkv = jnp.concatenate([prm['wq'], prm['wk'], prm['wv']], axis=1)
    b_qkv = jnp.concatenate([prm['bq'], prm['bk'], prm['bv']])[None, :]
    x_q, x_k, x_v = qkv_proj(x_p, w_qkv, b_qkv, mid, out_planes, tm=tn)

    # --- kNN grouping (host glue) ---
    # TODO(synk): in-kernel gather via scalar-prefetched idx (or bf16 storage of
    # the gathered tensors) would cut the ns-amplified HBM traffic further; kept
    # in f32 host-side JAX here for exact parity with the f32 reference.
    batch_id = jnp.searchsorted(o, jnp.arange(n), side='right')
    idx = knn_idx(p, batch_id, nsample)                       # (n, ns)
    idx_p = jnp.pad(idx, ((0, pad), (0, 0)))                  # padded rows -> row 0 (discarded)

    # lane-dense flattened grouped tensors (ns*C == 128 for the default config).
    # The x_q broadcast-subtract is folded into the gather (fuses in XLA), so
    # the kernel never needs the 0/1 neighbor-broadcast matmul nor x_q itself.
    pr_flat = (p_p[idx_p] - p_p[:, None, :]).reshape(n_pad, ns * 3)
    xkq_flat = (x_k[idx_p] - x_q[:, None, :]).reshape(n_pad, ns * mid)
    xv_flat = x_v[idx_p].reshape(n_pad, ns * out_planes)

    mats = fold_and_pack_params(prm, ns, share_planes)
    y = point_transformer_attention(xkq_flat, xv_flat, pr_flat, mats,
                                    tn=tn, out_planes=out_planes)
    return y[:n]


# ----------------------------- pure-JAX reference -----------------------------
def _bn(x, g, b, mu, var):
    return (x - mu) / jnp.sqrt(var + EPS) * g + b


def reference_forward(p, x, o, prm, *, nsample, share_planes):
    n = x.shape[0]
    x_q = x @ prm['wq'] + prm['bq']
    x_k = x @ prm['wk'] + prm['bk']
    x_v = x @ prm['wv'] + prm['bv']
    batch_id = jnp.searchsorted(o, jnp.arange(n), side='right')
    idx = knn_idx(p, batch_id, nsample)
    p_r_in = p[idx] - p[:, None, :]
    xk_g = x_k[idx]
    xv_g = x_v[idx]
    t = p_r_in @ prm['wp1'] + prm['bp1']
    t = jax.nn.relu(_bn(t, prm['gp'], prm['bep'], prm['mup'], prm['varp']))
    p_r = t @ prm['wp2'] + prm['bp2']
    r_qk = xk_g - x_q[:, None, :] + p_r
    u = jax.nn.relu(_bn(r_qk, prm['gw1'], prm['bew1'], prm['muw1'], prm['varw1']))
    u = u @ prm['ww1'] + prm['bw1']
    u = jax.nn.relu(_bn(u, prm['gw2'], prm['bew2'], prm['muw2'], prm['varw2']))
    w = u @ prm['ww2'] + prm['bw2']
    w = jax.nn.softmax(w, axis=1)
    out = xv_g.shape[-1]
    h = w.shape[-1]
    vpr = (xv_g + p_r).reshape(n, nsample, share_planes, h)
    res = jnp.einsum('ntsi,nti->nsi', vpr, w).reshape(n, out)
    return res


if __name__ == "__main__":
    key = jax.random.PRNGKey(0)
    in_planes, out_planes, share_planes, nsample = 32, 16, 8, 8
    n_per_batch, b = 380, 2
    n = n_per_batch * b            # 760 -> padded to 1024 with tn=512 (grid=2, even)

    kp, kx, kprm = jax.random.split(key, 3)
    p = jax.random.uniform(kp, (n, 3), jnp.float32)
    x = jax.random.normal(kx, (n, in_planes), jnp.float32)
    o = jnp.array([n_per_batch, n], dtype=jnp.int32)   # batch offsets (cumulative)
    prm = init_params(kprm, in_planes, out_planes, share_planes)

    y = point_transformer_layer(p, x, o, prm, nsample=nsample,
                                share_planes=share_planes, tn=512)
    y = jax.block_until_ready(y)

    y_ref = reference_forward(p, x, o, prm, nsample=nsample,
                              share_planes=share_planes)
    np.testing.assert_allclose(np.asarray(y), np.asarray(y_ref),
                               rtol=5e-3, atol=5e-3)
    print("KERNEL_OK")
</pallas_src>

<mosaic_0001>
module attributes {stable_mosaic.version = 11 : i64} {
  func.func @_qkv_kernel(%arg0: i32, %arg1: memref<512x32xf32, #tpu.memory_space<vmem>>, %arg2: memref<32x48xf32, #tpu.memory_space<vmem>>, %arg3: memref<1x48xf32, #tpu.memory_space<vmem>>, %arg4: memref<512x16xf32, #tpu.memory_space<vmem>>, %arg5: memref<512x16xf32, #tpu.memory_space<vmem>>, %arg6: memref<512x16xf32, #tpu.memory_space<vmem>>) attributes {dimension_semantics = [#tpu.dimension_semantics<parallel>], iteration_bounds = array<i64: 2>, scalar_prefetch = 0 : i64, scratch_operands = 0 : i64, tpu.core_type = #tpu.core_type<tc>, window_params = [{transform_indices = @transform_0, window_bounds = array<i64: 512, 32>}, {pipeline_mode = #tpu.pipeline_mode<synchronous>, transform_indices = @transform_1, window_bounds = array<i64: 32, 48>}, {pipeline_mode = #tpu.pipeline_mode<synchronous>, transform_indices = @transform_2, window_bounds = array<i64: 1, 48>}, {transform_indices = @transform_3, window_bounds = array<i64: 512, 16>}, {transform_indices = @transform_4, window_bounds = array<i64: 512, 16>}, {transform_indices = @transform_5, window_bounds = array<i64: 512, 16>}]} {
    %c0 = arith.constant 0 : index
    %c0_0 = arith.constant 0 : index
    %0 = vector.load %arg1[%c0, %c0_0] : memref<512x32xf32, #tpu.memory_space<vmem>>, vector<512x32xf32>
    %c0_1 = arith.constant 0 : index
    %c0_2 = arith.constant 0 : index
    %1 = vector.load %arg2[%c0_1, %c0_2] : memref<32x48xf32, #tpu.memory_space<vmem>>, vector<32x48xf32>
    %cst = arith.constant dense<0.000000e+00> : vector<512x48xf32>
    %2 = tpu.matmul %0, %1, %cst {dimension_numbers = #tpu.dot_dimension_numbers<[1], [0], [0], [1], [0, 0, 1, 1], [], []>} : vector<512x32xf32>, vector<32x48xf32>, vector<512x48xf32> -> vector<512x48xf32>
    %c0_3 = arith.constant 0 : index
    %c0_4 = arith.constant 0 : index
    %3 = vector.load %arg3[%c0_3, %c0_4] : memref<1x48xf32, #tpu.memory_space<vmem>>, vector<1x48xf32>
    %4 = vector.broadcast %3 : vector<1x48xf32> to vector<512x48xf32>
    %5 = arith.addf %2, %4 : vector<512x48xf32>
    %6 = vector.extract_strided_slice %5 {offsets = [0, 0], sizes = [512, 16], strides = [1, 1]} : vector<512x48xf32> to vector<512x16xf32>
    %c0_5 = arith.constant 0 : index
    %c0_6 = arith.constant 0 : index
    %7 = vector.load %arg4[%c0_5, %c0_6] : memref<512x16xf32, #tpu.memory_space<vmem>>, vector<512x16xf32>
    tpu.vector_store %arg4[%c0_5, %c0_6], %6 {strides = array<i32>} : memref<512x16xf32, #tpu.memory_space<vmem>>, vector<512x16xf32>,
    %8 = vector.extract_strided_slice %5 {offsets = [0, 16], sizes = [512, 16], strides = [1, 1]} : vector<512x48xf32> to vector<512x16xf32>
    %c0_7 = arith.constant 0 : index
    %c0_8 = arith.constant 0 : index
    %9 = vector.load %arg5[%c0_7, %c0_8] : memref<512x16xf32, #tpu.memory_space<vmem>>, vector<512x16xf32>
    tpu.vector_store %arg5[%c0_7, %c0_8], %8 {strides = array<i32>} : memref<512x16xf32, #tpu.memory_space<vmem>>, vector<512x16xf32>,
    %10 = vector.extract_strided_slice %5 {offsets = [0, 32], sizes = [512, 16], strides = [1, 1]} : vector<512x48xf32> to vector<512x16xf32>
    %c0_9 = arith.constant 0 : index
    %c0_10 = arith.constant 0 : index
    %11 = vector.load %arg6[%c0_9, %c0_10] : memref<512x16xf32, #tpu.memory_space<vmem>>, vector<512x16xf32>
    tpu.vector_store %arg6[%c0_9, %c0_10], %10 {strides = array<i32>} : memref<512x16xf32, #tpu.memory_space<vmem>>, vector<512x16xf32>,
    return
  }
  func.func @transform_0(%arg0: i32) -> (i32, i32) {
    %c0_i32 = arith.constant 0 : i32
    %c0_i32_0 = arith.constant 0 : i32
    return %arg0, %c0_i32 : i32, i32
  }
  func.func @transform_1(%arg0: i32) -> (i32, i32) {
    %c0_i32 = arith.constant 0 : i32
    %c0_i32_0 = arith.constant 0 : i32
    %c0_i32_1 = arith.constant 0 : i32
    return %c0_i32, %c0_i32_0 : i32, i32
  }
  func.func @transform_2(%arg0: i32) -> (i32, i32) {
    %c0_i32 = arith.constant 0 : i32
    %c0_i32_0 = arith.constant 0 : i32
    %c0_i32_1 = arith.constant 0 : i32
    return %c0_i32, %c0_i32_0 : i32, i32
  }
  func.func @transform_3(%arg0: i32) -> (i32, i32) {
    %c0_i32 = arith.constant 0 : i32
    %c0_i32_0 = arith.constant 0 : i32
    return %arg0, %c0_i32 : i32, i32
  }
  func.func @transform_4(%arg0: i32) -> (i32, i32) {
    %c0_i32 = arith.constant 0 : i32
    %c0_i32_0 = arith.constant 0 : i32
    return %arg0, %c0_i32 : i32, i32
  }
  func.func @transform_5(%arg0: i32) -> (i32, i32) {
    %c0_i32 = arith.constant 0 : i32
    %c0_i32_0 = arith.constant 0 : i32
    return %arg0, %c0_i32 : i32, i32
  }
}

</mosaic_0001>

<bundles_post_ra>
// kernel: tpu_custom_call.1
= control target key start
LH: loop header
LB: loop body
LE: loop exit
PB: predicated region body
PF: predicated region fallthrough
CT: control target
= control target key end

     0   :  { %s1636_s18 = smov 0   ;;  %s2629_s0 = inlined_call_operand.vmem [shape: f32[1024,32], index: 0, kind: input, shape index: {}]   ;;  %s2630_s1 = inlined_call_operand.vmem [shape: f32[32,48], index: 1, kind: input, shape index: {}]   ;;  %s2631_s2 = inlined_call_operand.vmem [shape: f32[1,48], index: 2, kind: input, shape index: {}]   ;;  %s2632_s3 = inlined_call_operand.vmem [shape: f32[1024,16], index: 3, kind: output, shape index: {0}]   ;;  %s2633_s4 = inlined_call_operand.vmem [shape: f32[1024,16], index: 4, kind: output, shape index: {1}]   ;;  %s2634_s5 = inlined_call_operand.vmem [shape: f32[1024,16], index: 5, kind: output, shape index: {2}]  }
   0x1 LB: > { %s1494_s19 = sadd.s32 4294967295, %s1602_s18   ;;  %p1498_p0 = scmp.ge.s32.totalorder %s1602_s18, 1  ;;  %s1602_s18 = sphi %s1636_s18, %s16_s18  }
   0x2   : > { %p193_p1 = scmp.lt.s32.totalorder %s1602_s18, 3 }
   0x4   : > { %p194_p2 = pnand %p1498_p0, %p193_p1 }
   0x5   : > { %s1499_s24 = sshll.u32 (!%p194_p2), %s1494_s19, 6  ;;  %s1604_s13 = smov (!%p194_p2), 96  }
   0x6   : > { %197 = sbr.rel (%p194_p2) target bundleno = 600 (0x258), region = 32  ;;  %p232_p3 = scmp.lt.s32.totalorder (!%p194_p2), %s1499_s24, 127 }
   0x7   : > { %s1605_s14 = smov (!%p194_p2), 112  }
   0xb   : > { %v322_v0 = vld [vmem:[%s2630_s1 + $0x18] sm:$0xff]  ;;  %v321_v1 = vld [vmem:[%s2630_s1 + $0x10] sm:$0xff]  ;;  %v320_v2 = vld [vmem:[%s2630_s1 + $0x8] sm:$0xff]  ;;  %s2636_s24 = smov (!%p232_p3, %s1499_s24), 127  ;;  %vm327_vm0 = vcmask 261120   ;;  %vm729_vm1 = vcmask 130048  }
   0xc   : > { %532 = vmatpush.msra.mxu0 %v322_v0  ;;  %1573 = vmatpush.msra.mxu1 %v322_v0  ;;  %v319_v3 = vld [vmem:[%s2630_s1] sm:$0xff]  ;;  %s1656_s29 = sshll.u32 %s2636_s24, 3 }
   0xd   : > { %1574 = vmatpush.msra.mxu2 %v322_v0  ;;  %1575 = vmatpush.msra.mxu3 %v322_v0  ;;  %s1662_s7 = scalar_lea.vmem %s2629_s0, %s1656_s29  ;;  %v1745_v44 = vld [vmem:[%s2631_s2] ss:$0 sm:$0xff]  ;;  %s1753_s12 = scalar_lea.vmem %s2632_s3, %s1656_s29 }
   0xe   : > { %533 = vmatpush.msra.mxu0 %v321_v1  ;;  %1576 = vmatpush.msra.mxu1 %v321_v1  ;;  %v255_v4 = vld [vmem:[%s1662_s7] sm:$0xff]  ;;  %v272_v8 = vld [vmem:[%s1662_s7 + $0x88] sm:$0xff]  ;;  %v257_v12 = vld [vmem:[%s1662_s7 + $0x10] sm:$0xff]  ;;  %s1998_s17 = scalar_lea.vmem %s2634_s5, %s1656_s29  ;;  %s2026_s21 = scalar_lea.vmem %s2633_s4, %s1656_s29 }
   0xf   : > { %1577 = vmatpush.msra.mxu2 %v321_v1  ;;  %1578 = vmatpush.msra.mxu3 %v321_v1  ;;  %v271_v5 = vld [vmem:[%s1662_s7 + $0x80] sm:$0xff]  ;;  %v256_v9 = vld [vmem:[%s1662_s7 + $0x8] sm:$0xff]  ;;  %v273_v13 = vld [vmem:[%s1662_s7 + $0x90] sm:$0xff] }
  0x10   : > { %534 = vmatpush.msra.mxu0 %v320_v2  ;;  %1579 = vmatpush.msra.mxu1 %v320_v2  ;;  %v287_v6 = vld [vmem:[%s1662_s7 + $0x100] sm:$0xff]  ;;  %v304_v10 = vld [vmem:[%s1662_s7 + $0x188] sm:$0xff]  ;;  %v305_v14 = vld [vmem:[%s1662_s7 + $0x190] sm:$0xff] }
  0x11   : > { %1580 = vmatpush.msra.mxu2 %v320_v2  ;;  %1581 = vmatpush.msra.mxu3 %v320_v2  ;;  %v303_v7 = vld [vmem:[%s1662_s7 + $0x180] sm:$0xff]  ;;  %v288_v11 = vld [vmem:[%s1662_s7 + $0x108] sm:$0xff]  ;;  %v289_v15 = vld [vmem:[%s1662_s7 + $0x110] sm:$0xff] }
  0x12   : > { %535 = vmatpush.msra.mxu0 %v319_v3  ;;  %1582 = vmatpush.msra.mxu1 %v319_v3  ;;  %v274_v16 = vld [vmem:[%s1662_s7 + $0x98] sm:$0xff]  ;;  %v259_v20 = vld [vmem:[%s1662_s7 + $0x20] sm:$0xff]  ;;  %v260_v24 = vld [vmem:[%s1662_s7 + $0x28] sm:$0xff] }
  0x13   : > { %1507 = vmatmul.msk.f32.vlgmr.msra.gmra.mxu0 %vm327_vm0, %v255_v4  ;;  %1523 = vmatmul.msk.f32.vlgmr.msra.gmra.mxu1 %vm327_vm0, %v271_v5  ;;  %v258_v17 = vld [vmem:[%s1662_s7 + $0x18] sm:$0xff]  ;;  %v275_v21 = vld [vmem:[%s1662_s7 + $0xa0] sm:$0xff]  ;;  %v276_v25 = vld [vmem:[%s1662_s7 + $0xa8] sm:$0xff] }
  0x14   : > { %1583 = vmatpush.msra.mxu2 %v319_v3  ;;  %1584 = vmatpush.msra.mxu3 %v319_v3  ;;  %v290_v18 = vld [vmem:[%s1662_s7 + $0x118] sm:$0xff]  ;;  %v291_v22 = vld [vmem:[%s1662_s7 + $0x120] sm:$0xff]  ;;  %v292_v26 = vld [vmem:[%s1662_s7 + $0x128] sm:$0xff] }
  0x15   : > { %1539 = vmatmul.msk.f32.vlgmr.msra.gmra.mxu2 %vm327_vm0, %v287_v6  ;;  %1555 = vmatmul.msk.f32.vlgmr.msra.gmra.mxu3 %vm327_vm0, %v303_v7  ;;  %v306_v19 = vld [vmem:[%s1662_s7 + $0x198] sm:$0xff]  ;;  %v307_v23 = vld [vmem:[%s1662_s7 + $0x1a0] sm:$0xff]  ;;  %v308_v27 = vld [vmem:[%s1662_s7 + $0x1a8] sm:$0xff] }
  0x16   : > { %v261_v28 = vld [vmem:[%s1662_s7 + $0x30] sm:$0xff]  ;;  %v262_v32 = vld [vmem:[%s1662_s7 + $0x38] sm:$0xff]  ;;  %v279_v36 = vld [vmem:[%s1662_s7 + $0xc0] sm:$0xff] }
  0x17   : > { %v277_v29 = vld [vmem:[%s1662_s7 + $0xb0] sm:$0xff]  ;;  %v278_v33 = vld [vmem:[%s1662_s7 + $0xb8] sm:$0xff]  ;;  %v263_v37 = vld [vmem:[%s1662_s7 + $0x40] sm:$0xff] }
  0x18   : > { %v293_v30 = vld [vmem:[%s1662_s7 + $0x130] sm:$0xff]  ;;  %v294_v34 = vld [vmem:[%s1662_s7 + $0x138] sm:$0xff]  ;;  %v295_v38 = vld [vmem:[%s1662_s7 + $0x140] sm:$0xff] }
  0x19   : > { %v309_v31 = vld [vmem:[%s1662_s7 + $0x1b0] sm:$0xff]  ;;  %v310_v35 = vld [vmem:[%s1662_s7 + $0x1b8] sm:$0xff]  ;;  %v311_v39 = vld [vmem:[%s1662_s7 + $0x1c0] sm:$0xff] }
  0x1a   : > { %v264_v40 = vld [vmem:[%s1662_s7 + $0x48] sm:$0xff]  ;;  %v265_v49 = vld [vmem:[%s1662_s7 + $0x50] sm:$0xff]  ;;  %v266_v5 = vld [vmem:[%s1662_s7 + $0x58] sm:$0xff] }
  0x1b   : > { %1524 = vmatmul.msk.f32.gmra.mxu1 %vm327_vm0, %v272_v8  ;;  %1508 = vmatmul.msk.f32.gmra.mxu0 %vm327_vm0, %v256_v9  ;;  %v280_v41 = vld [vmem:[%s1662_s7 + $0xc8] sm:$0xff]  ;;  %v281_v50 = vld [vmem:[%s1662_s7 + $0xd0] sm:$0xff]  ;;  %v282_v6 = vld [vmem:[%s1662_s7 + $0xd8] sm:$0xff] }
  0x1c   : > { %v296_v42 = vld [vmem:[%s1662_s7 + $0x148] sm:$0xff]  ;;  %v297_v59 = vld [vmem:[%s1662_s7 + $0x150] sm:$0xff] }
  0x1d   : > { %1556 = vmatmul.msk.f32.gmra.mxu3 %vm327_vm0, %v304_v10  ;;  %1540 = vmatmul.msk.f32.gmra.mxu2 %vm327_vm0, %v288_v11  ;;  %v312_v43 = vld [vmem:[%s1662_s7 + $0x1c8] sm:$0xff]  ;;  %v313_v60 = vld [vmem:[%s1662_s7 + $0x1d0] sm:$0xff] }
  0x23   : > { %1509 = vmatmul.msk.f32.gmra.mxu0 %vm327_vm0, %v257_v12  ;;  %1525 = vmatmul.msk.f32.gmra.mxu1 %vm327_vm0, %v273_v13 }
  0x25   : > { %1557 = vmatmul.msk.f32.gmra.mxu3 %vm327_vm0, %v305_v14  ;;  %1541 = vmatmul.msk.f32.gmra.mxu2 %vm327_vm0, %v289_v15  ;;  %v298_v15 = vld [vmem:[%s1662_s7 + $0x158] sm:$0xff] }
  0x2b   : > { %1526 = vmatmul.msk.f32.gmra.mxu1 %vm327_vm0, %v274_v16  ;;  %1510 = vmatmul.msk.f32.gmra.mxu0 %vm327_vm0, %v258_v17  ;;  %v314_v16 = vld [vmem:[%s1662_s7 + $0x1d8] sm:$0xff] }
  0x2d   : > { %1542 = vmatmul.msk.f32.gmra.mxu2 %vm327_vm0, %v290_v18  ;;  %1558 = vmatmul.msk.f32.gmra.mxu3 %vm327_vm0, %v306_v19 }
  0x33   : > { %1511 = vmatmul.msk.f32.gmra.mxu0 %vm327_vm0, %v259_v20  ;;  %1527 = vmatmul.msk.f32.gmra.mxu1 %vm327_vm0, %v275_v21 }
  0x35   : > { %1543 = vmatmul.msk.f32.gmra.mxu2 %vm327_vm0, %v291_v22  ;;  %1559 = vmatmul.msk.f32.gmra.mxu3 %vm327_vm0, %v307_v23 }
  0x3b   : > { %1512 = vmatmul.msk.f32.gmra.mxu0 %vm327_vm0, %v260_v24  ;;  %1528 = vmatmul.msk.f32.gmra.mxu1 %vm327_vm0, %v276_v25  ;;  %v267_v24 = vld [vmem:[%s1662_s7 + $0x60] sm:$0xff] }
  0x3c   : > { %v283_v25 = vld [vmem:[%s1662_s7 + $0xe0] sm:$0xff] }
  0x3d   : > { %1544 = vmatmul.msk.f32.gmra.mxu2 %vm327_vm0, %v292_v26  ;;  %1560 = vmatmul.msk.f32.gmra.mxu3 %vm327_vm0, %v308_v27  ;;  %v299_v27 = vld [vmem:[%s1662_s7 + $0x160] sm:$0xff] }
  0x43   : > { %1513 = vmatmul.msk.f32.gmra.mxu0 %vm327_vm0, %v261_v28  ;;  %1529 = vmatmul.msk.f32.gmra.mxu1 %vm327_vm0, %v277_v29  ;;  %v315_v28 = vld [vmem:[%s1662_s7 + $0x1e0] sm:$0xff] }
  0x45   : > { %1545 = vmatmul.msk.f32.gmra.mxu2 %vm327_vm0, %v293_v30  ;;  %1561 = vmatmul.msk.f32.gmra.mxu3 %vm327_vm0, %v309_v31 }
  0x4b   : > { %1514 = vmatmul.msk.f32.gmra.mxu0 %vm327_vm0, %v262_v32  ;;  %1530 = vmatmul.msk.f32.gmra.mxu1 %vm327_vm0, %v278_v33 }
  0x4d   : > { %1546 = vmatmul.msk.f32.gmra.mxu2 %vm327_vm0, %v294_v34  ;;  %1562 = vmatmul.msk.f32.gmra.mxu3 %vm327_vm0, %v310_v35  ;;  %v268_v35 = vld [vmem:[%s1662_s7 + $0x68] sm:$0xff] }
  0x53   : > { %1531 = vmatmul.msk.f32.gmra.mxu1 %vm327_vm0, %v279_v36  ;;  %1515 = vmatmul.msk.f32.gmra.mxu0 %vm327_vm0, %v263_v37  ;;  %v284_v36 = vld [vmem:[%s1662_s7 + $0xe8] sm:$0xff] }
  0x55   : > { %1547 = vmatmul.msk.f32.gmra.mxu2 %vm327_vm0, %v295_v38  ;;  %1563 = vmatmul.msk.f32.gmra.mxu3 %vm327_vm0, %v311_v39  ;;  %v300_v39 = vld [vmem:[%s1662_s7 + $0x168] sm:$0xff] }
  0x5b   : > { %1516 = vmatmul.msk.f32.gmra.mxu0 %vm327_vm0, %v264_v40  ;;  %1532 = vmatmul.msk.f32.gmra.mxu1 %vm327_vm0, %v280_v41  ;;  %v316_v40 = vld [vmem:[%s1662_s7 + $0x1e8] sm:$0xff] }
  0x5d   : > { %1548 = vmatmul.msk.f32.gmra.mxu2 %vm327_vm0, %v296_v42  ;;  %1564 = vmatmul.msk.f32.gmra.mxu3 %vm327_vm0, %v312_v43 }
  0x63   : > { %1517 = vmatmul.msk.f32.gmra.mxu0 %vm327_vm0, %v265_v49  ;;  %1533 = vmatmul.msk.f32.gmra.mxu1 %vm327_vm0, %v281_v50  ;;  %v285_v49 = vld [vmem:[%s1662_s7 + $0xf0] sm:$0xff] }
  0x65   : > { %1549 = vmatmul.msk.f32.gmra.mxu2 %vm327_vm0, %v297_v59  ;;  %1565 = vmatmul.msk.f32.gmra.mxu3 %vm327_vm0, %v313_v60 }
  0x6b   : > { %1518 = vmatmul.msk.f32.gmra.mxu0 %vm327_vm0, %v266_v5  ;;  %1534 = vmatmul.msk.f32.gmra.mxu1 %vm327_vm0, %v282_v6 }
  0x6d   : > { %1550 = vmatmul.msk.f32.gmra.mxu2 %vm327_vm0, %v298_v15  ;;  %1566 = vmatmul.msk.f32.gmra.mxu3 %vm327_vm0, %v314_v16 }
  0x73   : > { %1519 = vmatmul.msk.f32.gmra.mxu0 %vm327_vm0, %v267_v24  ;;  %1535 = vmatmul.msk.f32.gmra.mxu1 %vm327_vm0, %v283_v25 }
  0x75   : > { %1551 = vmatmul.msk.f32.gmra.mxu2 %vm327_vm0, %v299_v27  ;;  %1567 = vmatmul.msk.f32.gmra.mxu3 %vm327_vm0, %v315_v28 }
  0x7b   : > { %1520 = vmatmul.msk.f32.gmra.mxu0 %vm327_vm0, %v268_v35  ;;  %1536 = vmatmul.msk.f32.gmra.mxu1 %vm327_vm0, %v284_v36 }
  0x7d   : > { %1552 = vmatmul.msk.f32.gmra.mxu2 %vm327_vm0, %v300_v39  ;;  %1568 = vmatmul.msk.f32.gmra.mxu3 %vm327_vm0, %v316_v40 }
  0x83   : > { %1537 = vmatmul.msk.f32.gmra.mxu1 %vm327_vm0, %v285_v49 }
  0x90   : > { %v537_v45 = vpop.f32.mrf.mxu0  ;;  %v585_v46 = vpop.f32.mrf.mxu1 }
  0x91   : > { %v538_v47 = vadd.f32 %v1745_v44, %v537_v45  ;;  %v586_v48 = vadd.f32 %v1745_v44, %v585_v46 }
  0x93   : > { %730 = vst.msk [vmem:[%s1753_s12] sm:$0xff] %vm729_vm1, %v538_v47  ;;  %1146 = vrot.lane.b32.xlu2 %v586_v48, %s1604_s13  ;;  %890 = vrot.lane.b32.xlu1 %v586_v48, %s1605_s14 }
  0x94   : > { %746 = vst.msk [vmem:[%s1753_s12 + $0x80] sm:$0xff] %vm729_vm1, %v586_v48  ;;  %858 = vrot.lane.b32.xlu0 %v538_v47, %s1605_s14  ;;  %v269_v48 = vld [vmem:[%s1662_s7 + $0x70] sm:$0xff] }
  0x95   : > { %1521 = vmatmul.msk.f32.gmra.mxu0 %vm327_vm0, %v269_v48 }
  0x98   : > { %v633_v51 = vpop.f32.mrf.mxu2  ;;  %v681_v52 = vpop.f32.mrf.mxu3 }
  0x99   : > { %v634_v53 = vadd.f32 %v1745_v44, %v633_v51  ;;  %v1770_v54 = vadd.f32 %v1745_v44, %v681_v52  ;;  %v588_v55 = vpop.f32.mrf.mxu1  ;;  %v540_v56 = vpop.f32.mrf.mxu0  ;;  %v301_v52 = vld [vmem:[%s1662_s7 + $0x170] sm:$0xff] }
  0x9a   : > { %v541_v57 = vadd.f32 %v1745_v44, %v540_v56  ;;  %v589_v58 = vadd.f32 %v1745_v44, %v588_v55  ;;  %1553 = vmatmul.msk.f32.gmra.mxu2 %vm327_vm0, %v301_v52 }
  0x9b   : > { %762 = vst.msk [vmem:[%s1753_s12 + $0x100] sm:$0xff] %vm729_vm1, %v634_v53  ;;  %922 = vrot.lane.b32.xlu2 %v634_v53, %s1605_s14  ;;  %1114 = vrot.lane.b32.xlu1 %v538_v47, %s1604_s13 }
  0x9c   : > { %778 = vst.msk [vmem:[%s1753_s12 + $0x180] sm:$0xff] %vm729_vm1, %v1770_v54  ;;  %954 = vrot.lane.b32.xlu0 %v1770_v54, %s1605_s14 }
  0x9d   : > { %747 = vst.msk [vmem:[%s1753_s12 + $0x88] sm:$0xff] %vm729_vm1, %v589_v58 }
  0x9e   : > { %731 = vst.msk [vmem:[%s1753_s12 + $0x8] sm:$0xff] %vm729_vm1, %v541_v57 }
  0xa0   : > { %v684_v61 = vpop.f32.mrf.mxu3  ;;  %v636_v62 = vpop.f32.mrf.mxu2 }
  0xa1   : > { %v1792_v63 = vadd.f32 %v1745_v44, %v684_v61  ;;  %v637_v0 = vadd.f32 %v1745_v44, %v636_v62  ;;  %v543_v1 = vpop.f32.mrf.mxu0  ;;  %v591_v2 = vpop.f32.mrf.mxu1  ;;  %v270_v61 = vld [vmem:[%s1662_s7 + $0x78] sm:$0xff] }
  0xa2   : > { %v1796_v3 = vadd.f32 %v1745_v44, %v543_v1  ;;  %v1799_v4 = vadd.f32 %v1745_v44, %v591_v2  ;;  %v286_v62 = vld [vmem:[%s1662_s7 + $0xf8] sm:$0xff]  ;;  %1522 = vmatmul.msk.f32.gmra.mxu0 %vm327_vm0, %v270_v61 }
  0xa3   : > { %779 = vst.msk [vmem:[%s1753_s12 + $0x188] sm:$0xff] %vm729_vm1, %v1792_v63  ;;  %892 = vrot.lane.b32.xlu2 %v589_v58, %s1605_s14  ;;  %956 = vrot.lane.b32.xlu1 %v1792_v63, %s1605_s14  ;;  %v302_v2 = vld [vmem:[%s1662_s7 + $0x178] sm:$0xff] }
  0xa4   : > { %1178 = vrot.lane.b32.xlu0 %v634_v53, %s1604_s13  ;;  %763 = vst.msk [vmem:[%s1753_s12 + $0x108] sm:$0xff] %vm729_vm1, %v637_v0  ;;  %v317_v53 = vld [vmem:[%s1662_s7 + $0x1f0] sm:$0xff]  ;;  %1538 = vmatmul.msk.f32.gmra.mxu1 %vm327_vm0, %v286_v62 }
  0xa5   : > { %732 = vst.msk [vmem:[%s1753_s12 + $0x10] sm:$0xff] %vm729_vm1, %v1796_v3  ;;  %1569 = vmatmul.msk.f32.gmra.mxu3 %vm327_vm0, %v317_v53  ;;  %1554 = vmatmul.msk.f32.gmra.mxu2 %vm327_vm0, %v302_v2 }
  0xa6   : > { %748 = vst.msk [vmem:[%s1753_s12 + $0x90] sm:$0xff] %vm729_vm1, %v1799_v4 }
  0xa8   : > { %v687_v7 = vpop.f32.mrf.mxu3  ;;  %v639_v8 = vpop.f32.mrf.mxu2 }
  0xa9   : > { %v1821_v9 = vadd.f32 %v1745_v44, %v687_v7  ;;  %v594_v10 = vpop.f32.mrf.mxu1  ;;  %v546_v11 = vpop.f32.mrf.mxu0  ;;  %v640_v12 = vadd.f32 %v1745_v44, %v639_v8 }
  0xaa   : > { %v1825_v13 = vadd.f32 %v1745_v44, %v546_v11  ;;  %v1833_v14 = vadd.f32 %v1745_v44, %v594_v10 }
  0xab   : > { %1116 = vrot.lane.b32.xlu2 %v541_v57, %s1604_s13  ;;  %1180 = vrot.lane.b32.xlu1 %v637_v0, %s1604_s13  ;;  %780 = vst.msk [vmem:[%s1753_s12 + $0x190] sm:$0xff] %vm729_vm1, %v1821_v9 }
  0xac   : > { %860 = vrot.lane.b32.xlu0 %v541_v57, %s1605_s14  ;;  %764 = vst.msk [vmem:[%s1753_s12 + $0x110] sm:$0xff] %vm729_vm1, %v640_v12 }
  0xad   : > { %749 = vst.msk [vmem:[%s1753_s12 + $0x98] sm:$0xff] %vm729_vm1, %v1833_v14 }
  0xae   : > { %733 = vst.msk [vmem:[%s1753_s12 + $0x18] sm:$0xff] %vm729_vm1, %v1825_v13 }
  0xb0   : > { %v642_v17 = vpop.f32.mrf.mxu2  ;;  %v690_v18 = vpop.f32.mrf.mxu3 }
  0xb1   : > { %v1849_v19 = vadd.f32 %v1745_v44, %v642_v17  ;;  %v549_v20 = vpop.f32.mrf.mxu0  ;;  %v1852_v21 = vadd.f32 %v1745_v44, %v690_v18  ;;  %v597_v23 = vpop.f32.mrf.mxu1 }
  0xb2   : > { %v1855_v22 = vadd.f32 %v1745_v44, %v549_v20  ;;  %v598_v26 = vadd.f32 %v1745_v44, %v597_v23 }
  0xb3   : > { %958 = vrot.lane.b32.xlu2 %v1821_v9, %s1605_s14  ;;  %862 = vrot.lane.b32.xlu1 %v1796_v3, %s1605_s14  ;;  %765 = vst.msk [vmem:[%s1753_s12 + $0x118] sm:$0xff] %vm729_vm1, %v1849_v19 }
  0xb4   : > { %1148 = vrot.lane.b32.xlu0 %v589_v58, %s1604_s13  ;;  %734 = vst.msk [vmem:[%s1753_s12 + $0x20] sm:$0xff] %vm729_vm1, %v1855_v22 }
  0xb5   : > { %781 = vst.msk [vmem:[%s1753_s12 + $0x198] sm:$0xff] %vm729_vm1, %v1852_v21 }
  0xb6   : > { %750 = vst.msk [vmem:[%s1753_s12 + $0xa0] sm:$0xff] %vm729_vm1, %v598_v26 }
  0xb8   : > { %v645_v29 = vpop.f32.mrf.mxu2  ;;  %v693_v30 = vpop.f32.mrf.mxu3 }
  0xb9   : > { %v1887_v31 = vadd.f32 %v1745_v44, %v645_v29  ;;  %v1890_v32 = vadd.f32 %v1745_v44, %v693_v30  ;;  %v552_v33 = vpop.f32.mrf.mxu0  ;;  %v600_v34 = vpop.f32.mrf.mxu1 }
  0xba   : > { %v1906_v37 = vadd.f32 %v1745_v44, %v552_v33  ;;  %v601_v38 = vadd.f32 %v1745_v44, %v600_v34 }
  0xbb   : > { %1182 = vrot.lane.b32.xlu2 %v640_v12, %s1604_s13  ;;  %1150 = vrot.lane.b32.xlu1 %v1799_v4, %s1604_s13  ;;  %766 = vst.msk [vmem:[%s1753_s12 + $0x120] sm:$0xff] %vm729_vm1, %v1887_v31 }
  0xbc   : > { %924 = vrot.lane.b32.xlu0 %v637_v0, %s1605_s14  ;;  %782 = vst.msk [vmem:[%s1753_s12 + $0x1a0] sm:$0xff] %vm729_vm1, %v1890_v32 }
  0xbd   : > { %735 = vst.msk [vmem:[%s1753_s12 + $0x28] sm:$0xff] %vm729_vm1, %v1906_v37 }
  0xbe   : > { %751 = vst.msk [vmem:[%s1753_s12 + $0xa8] sm:$0xff] %vm729_vm1, %v601_v38 }
  0xc0   : > { %v648_v41 = vpop.f32.mrf.mxu2  ;;  %v696_v42 = vpop.f32.mrf.mxu3 }
  0xc1   : > { %v1927_v43 = vadd.f32 %v1745_v44, %v648_v41  ;;  %v1930_v45 = vadd.f32 %v1745_v44, %v696_v42  ;;  %v555_v46 = vpop.f32.mrf.mxu0  ;;  %v603_v47 = vpop.f32.mrf.mxu1 }
  0xc2   : > { %v1947_v50 = vadd.f32 %v1745_v44, %v555_v46  ;;  %v604_v51 = vadd.f32 %v1745_v44, %v603_v47 }
  0xc3   : > { %1152 = vrot.lane.b32.xlu2 %v1833_v14, %s1604_s13  ;;  %926 = vrot.lane.b32.xlu1 %v640_v12, %s1605_s14  ;;  %767 = vst.msk [vmem:[%s1753_s12 + $0x128] sm:$0xff] %vm729_vm1, %v1927_v43 }
  0xc4   : > { %894 = vrot.lane.b32.xlu0 %v1799_v4, %s1605_s14  ;;  %783 = vst.msk [vmem:[%s1753_s12 + $0x1a8] sm:$0xff] %vm729_vm1, %v1930_v45 }
  0xc5   : > { %736 = vst.msk [vmem:[%s1753_s12 + $0x30] sm:$0xff] %vm729_vm1, %v1947_v50 }
  0xc6   : > { %752 = vst.msk [vmem:[%s1753_s12 + $0xb0] sm:$0xff] %vm729_vm1, %v604_v51 }
  0xc8   : > { %v651_v55 = vpop.f32.mrf.mxu2  ;;  %v699_v56 = vpop.f32.mrf.mxu3 }
  0xc9   : > { %v1966_v57 = vadd.f32 %v1745_v44, %v651_v55  ;;  %v1969_v58 = vadd.f32 %v1745_v44, %v699_v56  ;;  %v558_v59 = vpop.f32.mrf.mxu0  ;;  %v606_v60 = vpop.f32.mrf.mxu1 }
  0xca   : > { %v1986_v0 = vadd.f32 %v1745_v44, %v558_v59  ;;  %v607_v1 = vadd.f32 %v1745_v44, %v606_v60 }
  0xcb   : > { %928 = vrot.lane.b32.xlu2 %v1849_v19, %s1605_s14  ;;  %864 = vrot.lane.b32.xlu1 %v1825_v13, %s1605_s14  ;;  %768 = vst.msk [vmem:[%s1753_s12 + $0x130] sm:$0xff] %vm729_vm1, %v1966_v57 }
  0xcc   : > { %1118 = vrot.lane.b32.xlu0 %v1796_v3, %s1604_s13  ;;  %784 = vst.msk [vmem:[%s1753_s12 + $0x1b0] sm:$0xff] %vm729_vm1, %v1969_v58  ;;  %v318_v3 = vld [vmem:[%s1662_s7 + $0x1f8] sm:$0xff] }
  0xcd   : > { %737 = vst.msk [vmem:[%s1753_s12 + $0x38] sm:$0xff] %vm729_vm1, %v1986_v0  ;;  %1570 = vmatmul.msk.f32.gmra.mxu3 %vm327_vm0, %v318_v3 }
  0xce   : > { %753 = vst.msk [vmem:[%s1753_s12 + $0xb8] sm:$0xff] %vm729_vm1, %v607_v1 }
  0xd0   : > { %v654_v5 = vpop.f32.mrf.mxu2  ;;  %v702_v6 = vpop.f32.mrf.mxu3 }
  0xd1   : > { %v2013_v7 = vadd.f32 %v1745_v44, %v654_v5  ;;  %v2016_v8 = vadd.f32 %v1745_v44, %v702_v6  ;;  %v561_v11 = vpop.f32.mrf.mxu0  ;;  %v609_v12 = vpop.f32.mrf.mxu1 }
  0xd3   : > { %866 = vrot.lane.b32.xlu2 %v1855_v22, %s1605_s14  ;;  %896 = vrot.lane.b32.xlu1 %v1833_v14, %s1605_s14  ;;  %769 = vst.msk [vmem:[%s1753_s12 + $0x138] sm:$0xff] %vm729_vm1, %v2013_v7  ;;  %v610_v14 = vadd.f32 %v1745_v44, %v609_v12 }
  0xd4   : > { %960 = vrot.lane.b32.xlu0 %v1852_v21, %s1605_s14  ;;  %785 = vst.msk [vmem:[%s1753_s12 + $0x1b8] sm:$0xff] %vm729_vm1, %v2016_v8 }
  0xd5   : > { %754 = vst.msk [vmem:[%s1753_s12 + $0xc0] sm:$0xff] %vm729_vm1, %v610_v14 }
  0xd8   : > { %v657_v16 = vpop.f32.mrf.mxu2  ;;  %v705_v17 = vpop.f32.mrf.mxu3 }
  0xd9   : > { %v2054_v18 = vadd.f32 %v1745_v44, %v657_v16  ;;  %v2057_v20 = vadd.f32 %v1745_v44, %v705_v17  ;;  %v564_v25 = vpop.f32.mrf.mxu0 }
  0xda   : > { %v2078_v27 = vadd.f32 %v1745_v44, %v564_v25 }
  0xdb   : > { %898 = vrot.lane.b32.xlu2 %v598_v26, %s1605_s14  ;;  %1120 = vrot.lane.b32.xlu1 %v1825_v13, %s1604_s13  ;;  %v2039_v13 = vadd.f32 %v1745_v44, %v561_v11  ;;  %770 = vst.msk [vmem:[%s1753_s12 + $0x140] sm:$0xff] %vm729_vm1, %v2054_v18 }
  0xdc   : > { %1154 = vrot.lane.b32.xlu0 %v598_v26, %s1604_s13  ;;  %786 = vst.msk [vmem:[%s1753_s12 + $0x1c0] sm:$0xff] %vm729_vm1, %v2057_v20  ;;  %v612_v26 = vpop.f32.mrf.mxu1 }
  0xdd   : > { %738 = vst.msk [vmem:[%s1753_s12 + $0x40] sm:$0xff] %vm729_vm1, %v2039_v13  ;;  %v613_v28 = vadd.f32 %v1745_v44, %v612_v26 }
  0xde   : > { %739 = vst.msk [vmem:[%s1753_s12 + $0x48] sm:$0xff] %vm729_vm1, %v2078_v27 }
  0xdf   : > { %755 = vst.msk [vmem:[%s1753_s12 + $0xc8] sm:$0xff] %vm729_vm1, %v613_v28 }
  0xe0   : > { %v660_v34 = vpop.f32.mrf.mxu2  ;;  %v708_v35 = vpop.f32.mrf.mxu3 }
  0xe1   : > { %v2097_v36 = vadd.f32 %v1745_v44, %v660_v34  ;;  %v567_v41 = vpop.f32.mrf.mxu0 }
  0xe2   : > { %v2121_v46 = vadd.f32 %v1745_v44, %v567_v41 }
  0xe3   : > { %1122 = vrot.lane.b32.xlu2 %v1855_v22, %s1604_s13  ;;  %962 = vrot.lane.b32.xlu1 %v1890_v32, %s1605_s14  ;;  %771 = vst.msk [vmem:[%s1753_s12 + $0x148] sm:$0xff] %vm729_vm1, %v2097_v36 }
  0xe4   : > { %930 = vrot.lane.b32.xlu0 %v1887_v31, %s1605_s14  ;;  %v615_v42 = vpop.f32.mrf.mxu1  ;;  %740 = vst.msk [vmem:[%s1753_s12 + $0x50] sm:$0xff] %vm729_vm1, %v2121_v46 }
  0xe5   : > { %v2124_v47 = vadd.f32 %v1745_v44, %v615_v42 }
  0xe7   : > { %756 = vst.msk [vmem:[%s1753_s12 + $0xd0] sm:$0xff] %vm729_vm1, %v2124_v47 }
  0xe8   : > { %v711_v52 = vpop.f32.mrf.mxu3 }
  0xe9   : > { %v2146_v55 = vadd.f32 %v1745_v44, %v711_v52  ;;  %v570_v61 = vpop.f32.mrf.mxu0 }
  0xeb   : > { %868 = vrot.lane.b32.xlu2 %v1906_v37, %s1605_s14  ;;  %1156 = vrot.lane.b32.xlu1 %v601_v38, %s1604_s13  ;;  %788 = vst.msk [vmem:[%s1753_s12 + $0x1d0] sm:$0xff] %vm729_vm1, %v2146_v55 }
  0xec   : > { %900 = vrot.lane.b32.xlu0 %v601_v38, %s1605_s14  ;;  %v618_v62 = vpop.f32.mrf.mxu1 }
  0xed   : > { %v1147_v4 = vpop.permute.xlu2 %1146 }
  0xee   : > { %1322 = vst.msk [vmem:[%s1998_s17 + $0x80] sm:$0xff] %vm729_vm1, %v1147_v4 }
  0xf0   : > { %v714_v6 = vpop.f32.mrf.mxu3 }
  0xf1   : > { %v2192_v11 = vadd.f32 %v1745_v44, %v714_v6 }
  0xf3   : > { %964 = vrot.lane.b32.xlu2 %v1930_v45, %s1605_s14  ;;  %932 = vrot.lane.b32.xlu1 %v1927_v43, %s1605_s14  ;;  %789 = vst.msk [vmem:[%s1753_s12 + $0x1d8] sm:$0xff] %vm729_vm1, %v2192_v11 }
  0xf4   : > { %1124 = vrot.lane.b32.xlu0 %v1906_v37, %s1604_s13  ;;  %v2100_v37 = vadd.f32 %v1745_v44, %v708_v35  ;;  %v621_v16 = vpop.f32.mrf.mxu1 }
  0xf5   : > { %v923_v10 = vpop.permute.xlu2 %922 }
  0xf6   : > { %1082 = vst.msk [vmem:[%s2026_s21 + $0x100] sm:$0xff] %vm729_vm1, %v923_v10 }
  0xf7   : > { %787 = vst.msk [vmem:[%s1753_s12 + $0x1c8] sm:$0xff] %vm729_vm1, %v2100_v37 }
  0xfb   : > { %1158 = vrot.lane.b32.xlu2 %v604_v51, %s1604_s13  ;;  %902 = vrot.lane.b32.xlu1 %v604_v51, %s1605_s14  ;;  %v663_v51 = vpop.f32.mrf.mxu2 }
  0xfc   : > { %870 = vrot.lane.b32.xlu0 %v1947_v50, %s1605_s14  ;;  %v2143_v53 = vadd.f32 %v1745_v44, %v663_v51 }
  0xfd   : > { %v893_v15 = vpop.permute.xlu2 %892 }
  0xfe   : > { %1067 = vst.msk [vmem:[%s2026_s21 + $0x88] sm:$0xff] %vm729_vm1, %v893_v15  ;;  %v573_v15 = vpop.f32.mrf.mxu0 }
  0xff   : > { %772 = vst.msk [vmem:[%s1753_s12 + $0x150] sm:$0xff] %vm729_vm1, %v2143_v53  ;;  %v2213_v17 = vadd.f32 %v1745_v44, %v573_v15 }
 0x101   : > { %742 = vst.msk [vmem:[%s1753_s12 + $0x60] sm:$0xff] %vm729_vm1, %v2213_v17 }
 0x103   : > { %934 = vrot.lane.b32.xlu2 %v1966_v57, %s1605_s14  ;;  %1126 = vrot.lane.b32.xlu1 %v1947_v50, %s1604_s13  ;;  %v666_v5 = vpop.f32.mrf.mxu2 }
 0x104   : > { %966 = vrot.lane.b32.xlu0 %v1969_v58, %s1605_s14  ;;  %v2189_v10 = vadd.f32 %v1745_v44, %v666_v5 }
 0x105   : > { %v891_v22 = vpop.permute.xlu1 %890  ;;  %v1117_v23 = vpop.permute.xlu2 %1116 }
 0x106   : > { %1066 = vst.msk [vmem:[%s2026_s21 + $0x80] sm:$0xff] %vm729_vm1, %v891_v22  ;;  %v859_v24 = vpop.permute.xlu0 %858  ;;  %v622_v22 = vadd.f32 %v1745_v44, %v621_v16  ;;  %v576_v35 = vpop.f32.mrf.mxu0 }
 0x107   : > { %1307 = vst.msk [vmem:[%s1998_s17 + $0x8] sm:$0xff] %vm729_vm1, %v1117_v23 }
 0x108   : > { %1050 = vst.msk [vmem:[%s2026_s21] sm:$0xff] %vm729_vm1, %v859_v24 }
 0x109   : > { %773 = vst.msk [vmem:[%s1753_s12 + $0x158] sm:$0xff] %vm729_vm1, %v2189_v10 }
 0x10a   : > { %758 = vst.msk [vmem:[%s1753_s12 + $0xe0] sm:$0xff] %vm729_vm1, %v622_v22 }
 0x10b   : > { %904 = vrot.lane.b32.xlu2 %v607_v1, %s1605_s14  ;;  %872 = vrot.lane.b32.xlu1 %v1986_v0, %s1605_s14  ;;  %v669_v26 = vpop.f32.mrf.mxu2 }
 0x10c   : > { %1160 = vrot.lane.b32.xlu0 %v607_v1, %s1604_s13  ;;  %v2170_v1 = vadd.f32 %v1745_v44, %v618_v62 }
 0x10d   : > { %v959_v29 = vpop.permute.xlu2 %958  ;;  %v1115_v30 = vpop.permute.xlu1 %1114 }
 0x10e   : > { %1100 = vst.msk [vmem:[%s2026_s21 + $0x190] sm:$0xff] %vm729_vm1, %v959_v29  ;;  %v955_v33 = vpop.permute.xlu0 %954 }
 0x10f   : > { %1306 = vst.msk [vmem:[%s1998_s17] sm:$0xff] %vm729_vm1, %v1115_v30 }
 0x110   : > { %1098 = vst.msk [vmem:[%s2026_s21 + $0x180] sm:$0xff] %vm729_vm1, %v955_v33 }
 0x111   : > { %757 = vst.msk [vmem:[%s1753_s12 + $0xd8] sm:$0xff] %vm729_vm1, %v2170_v1 }
 0x113   : > { %1128 = vrot.lane.b32.xlu2 %v1986_v0, %s1604_s13  ;;  %968 = vrot.lane.b32.xlu1 %v2016_v8, %s1605_s14  ;;  %v2167_v0 = vadd.f32 %v1745_v44, %v570_v61 }
 0x114   : > { %936 = vrot.lane.b32.xlu0 %v2013_v7, %s1605_s14 }
 0x115   : > { %v1183_v38 = vpop.permute.xlu2 %1182  ;;  %v957_v39 = vpop.permute.xlu1 %956  ;;  %741 = vst.msk [vmem:[%s1753_s12 + $0x58] sm:$0xff] %vm729_vm1, %v2167_v0 }
 0x116   : > { %1340 = vst.msk [vmem:[%s1998_s17 + $0x110] sm:$0xff] %vm729_vm1, %v1183_v38  ;;  %v1179_v40 = vpop.permute.xlu0 %1178  ;;  %v624_v38 = vpop.f32.mrf.mxu1 }
 0x117   : > { %1099 = vst.msk [vmem:[%s2026_s21 + $0x188] sm:$0xff] %vm729_vm1, %v957_v39  ;;  %v2258_v39 = vadd.f32 %v1745_v44, %v576_v35 }
 0x118   : > { %1338 = vst.msk [vmem:[%s1998_s17 + $0x100] sm:$0xff] %vm729_vm1, %v1179_v40  ;;  %v2261_v40 = vadd.f32 %v1745_v44, %v624_v38 }
 0x119   : > { %743 = vst.msk [vmem:[%s1753_s12 + $0x68] sm:$0xff] %vm729_vm1, %v2258_v39 }
 0x11a   : > { %759 = vst.msk [vmem:[%s1753_s12 + $0xe8] sm:$0xff] %vm729_vm1, %v2261_v40 }
 0x11b   : > { %874 = vrot.lane.b32.xlu2 %v2039_v13, %s1605_s14  ;;  %1162 = vrot.lane.b32.xlu1 %v610_v14, %s1604_s13 }
 0x11c   : > { %906 = vrot.lane.b32.xlu0 %v610_v14, %s1605_s14 }
 0x11d   : > { %v1153_v48 = vpop.permute.xlu2 %1152  ;;  %v1181_v49 = vpop.permute.xlu1 %1180 }
 0x11e   : > { %1325 = vst.msk [vmem:[%s1998_s17 + $0x98] sm:$0xff] %vm729_vm1, %v1153_v48  ;;  %v861_v50 = vpop.permute.xlu0 %860 }
 0x11f   : > { %1339 = vst.msk [vmem:[%s1998_s17 + $0x108] sm:$0xff] %vm729_vm1, %v1181_v49 }
 0x120   : > { %1051 = vst.msk [vmem:[%s2026_s21 + $0x8] sm:$0xff] %vm729_vm1, %v861_v50 }
 0x123   : > { %970 = vrot.lane.b32.xlu2 %v2057_v20, %s1605_s14  ;;  %938 = vrot.lane.b32.xlu1 %v2054_v18, %s1605_s14 }
 0x124   : > { %1130 = vrot.lane.b32.xlu0 %v2039_v13, %s1604_s13 }
 0x125   : > { %v929_v56 = vpop.permute.xlu2 %928  ;;  %v863_v59 = vpop.permute.xlu1 %862 }
 0x126   : > { %1085 = vst.msk [vmem:[%s2026_s21 + $0x118] sm:$0xff] %vm729_vm1, %v929_v56  ;;  %v1149_v60 = vpop.permute.xlu0 %1148 }
 0x127   : > { %1052 = vst.msk [vmem:[%s2026_s21 + $0x10] sm:$0xff] %vm729_vm1, %v863_v59  ;;  %v579_v59 = vpop.f32.mrf.mxu0 }
 0x128   : > { %1323 = vst.msk [vmem:[%s1998_s17 + $0x88] sm:$0xff] %vm729_vm1, %v1149_v60  ;;  %v627_v60 = vpop.f32.mrf.mxu1  ;;  %v2306_v61 = vadd.f32 %v1745_v44, %v579_v59 }
 0x129   : > { %v628_v62 = vadd.f32 %v1745_v44, %v627_v60 }
 0x12a   : > { %744 = vst.msk [vmem:[%s1753_s12 + $0x70] sm:$0xff] %vm729_vm1, %v2306_v61 }
 0x12b   : > { %1164 = vrot.lane.b32.xlu2 %v613_v28, %s1604_s13  ;;  %908 = vrot.lane.b32.xlu1 %v613_v28, %s1605_s14  ;;  %v2234_v28 = vadd.f32 %v1745_v44, %v669_v26  ;;  %760 = vst.msk [vmem:[%s1753_s12 + $0xf0] sm:$0xff] %vm729_vm1, %v628_v62 }
 0x12c   : > { %876 = vrot.lane.b32.xlu0 %v2078_v27, %s1605_s14 }
 0x12d   : > { %v867_v2 = vpop.permute.xlu2 %866  ;;  %v1151_v3 = vpop.permute.xlu1 %1150  ;;  %774 = vst.msk [vmem:[%s1753_s12 + $0x160] sm:$0xff] %vm729_vm1, %v2234_v28 }
 0x12e   : > { %1054 = vst.msk [vmem:[%s2026_s21 + $0x20] sm:$0xff] %vm729_vm1, %v867_v2  ;;  %v925_v4 = vpop.permute.xlu0 %924 }
 0x12f   : > { %1324 = vst.msk [vmem:[%s1998_s17 + $0x90] sm:$0xff] %vm729_vm1, %v1151_v3  ;;  %v582_v15 = vpop.f32.mrf.mxu0 }
 0x130   : > { %1083 = vst.msk [vmem:[%s2026_s21 + $0x108] sm:$0xff] %vm729_vm1, %v925_v4  ;;  %v630_v16 = vpop.f32.mrf.mxu1 }
 0x133   : > { %940 = vrot.lane.b32.xlu2 %v2097_v36, %s1605_s14  ;;  %1132 = vrot.lane.b32.xlu1 %v2078_v27, %s1604_s13  ;;  %v717_v27 = vpop.f32.mrf.mxu3 }
 0x134   : > { %972 = vrot.lane.b32.xlu0 %v2100_v37, %s1605_s14  ;;  %v2237_v29 = vadd.f32 %v1745_v44, %v717_v27 }
 0x135   : > { %v899_v12 = vpop.permute.xlu2 %898  ;;  %v927_v13 = vpop.permute.xlu1 %926 }
 0x136   : > { %1070 = vst.msk [vmem:[%s2026_s21 + $0xa0] sm:$0xff] %vm729_vm1, %v899_v12  ;;  %v895_v14 = vpop.permute.xlu0 %894 }
 0x137   : > { %1084 = vst.msk [vmem:[%s2026_s21 + $0x110] sm:$0xff] %vm729_vm1, %v927_v13 }
 0x138   : > { %1068 = vst.msk [vmem:[%s2026_s21 + $0x90] sm:$0xff] %vm729_vm1, %v895_v14 }
 0x139   : > { %790 = vst.msk [vmem:[%s1753_s12 + $0x1e0] sm:$0xff] %vm729_vm1, %v2237_v29 }
 0x13b   : > { %910 = vrot.lane.b32.xlu2 %v2124_v47, %s1605_s14  ;;  %878 = vrot.lane.b32.xlu1 %v2121_v46, %s1605_s14  ;;  %v720_v48 = vpop.f32.mrf.mxu3 }
 0x13c   : > { %1166 = vrot.lane.b32.xlu0 %v2124_v47, %s1604_s13  ;;  %v672_v47 = vpop.f32.mrf.mxu2  ;;  %v2285_v50 = vadd.f32 %v1745_v44, %v720_v48 }
 0x13d   : > { %v1123_v23 = vpop.permute.xlu2 %1122  ;;  %v865_v24 = vpop.permute.xlu1 %864  ;;  %v2282_v49 = vadd.f32 %v1745_v44, %v672_v47 }
 0x13e   : > { %1310 = vst.msk [vmem:[%s1998_s17 + $0x20] sm:$0xff] %vm729_vm1, %v1123_v23  ;;  %v1119_v25 = vpop.permute.xlu0 %1118 }
 0x13f   : > { %1053 = vst.msk [vmem:[%s2026_s21 + $0x18] sm:$0xff] %vm729_vm1, %v865_v24 }
 0x140   : > { %1308 = vst.msk [vmem:[%s1998_s17 + $0x10] sm:$0xff] %vm729_vm1, %v1119_v25 }
 0x141   : > { %775 = vst.msk [vmem:[%s1753_s12 + $0x168] sm:$0xff] %vm729_vm1, %v2282_v49 }
 0x142   : > { %791 = vst.msk [vmem:[%s1753_s12 + $0x1e8] sm:$0xff] %vm729_vm1, %v2285_v50 }
 0x143   : > { %1134 = vrot.lane.b32.xlu2 %v2121_v46, %s1604_s13  ;;  %974 = vrot.lane.b32.xlu1 %v2146_v55, %s1605_s14  ;;  %v723_v4 = vpop.f32.mrf.mxu3 }
 0x144   : > { %942 = vrot.lane.b32.xlu0 %v2143_v53, %s1605_s14  ;;  %v675_v3 = vpop.f32.mrf.mxu2  ;;  %v2328_v6 = vadd.f32 %v1745_v44, %v723_v4 }
 0x145   : > { %v869_v30 = vpop.permute.xlu2 %868  ;;  %v897_v33 = vpop.permute.xlu1 %896  ;;  %v2325_v5 = vadd.f32 %v1745_v44, %v675_v3 }
 0x146   : > { %1055 = vst.msk [vmem:[%s2026_s21 + $0x28] sm:$0xff] %vm729_vm1, %v869_v30  ;;  %v961_v34 = vpop.permute.xlu0 %960 }
 0x147   : > { %1069 = vst.msk [vmem:[%s2026_s21 + $0x98] sm:$0xff] %vm729_vm1, %v897_v33 }
 0x148   : > { %1101 = vst.msk [vmem:[%s2026_s21 + $0x198] sm:$0xff] %vm729_vm1, %v961_v34 }
 0x149   : > { %776 = vst.msk [vmem:[%s1753_s12 + $0x170] sm:$0xff] %vm729_vm1, %v2325_v5 }
 0x14a   : > { %792 = vst.msk [vmem:[%s1753_s12 + $0x1f0] sm:$0xff] %vm729_vm1, %v2328_v6 }
 0x14b   : > { %880 = vrot.lane.b32.xlu2 %v2167_v0, %s1605_s14  ;;  %1168 = vrot.lane.b32.xlu1 %v2170_v1, %s1604_s13 }
 0x14c   : > { %912 = vrot.lane.b32.xlu0 %v2170_v1, %s1605_s14  ;;  %v678_v26 = vpop.f32.mrf.mxu2 }
 0x14d   : > { %v965_v41 = vpop.permute.xlu2 %964  ;;  %v1121_v42 = vpop.permute.xlu1 %1120  ;;  %v2367_v30 = vadd.f32 %v1745_v44, %v678_v26 }
 0x14e   : > { %1103 = vst.msk [vmem:[%s2026_s21 + $0x1a8] sm:$0xff] %vm729_vm1, %v965_v41  ;;  %v1155_v46 = vpop.permute.xlu0 %1154 }
 0x14f   : > { %1309 = vst.msk [vmem:[%s1998_s17 + $0x18] sm:$0xff] %vm729_vm1, %v1121_v42 }
 0x150   : > { %1326 = vst.msk [vmem:[%s1998_s17 + $0xa0] sm:$0xff] %vm729_vm1, %v1155_v46  ;;  %v726_v27 = vpop.f32.mrf.mxu3 }
 0x151   : > { %v2370_v33 = vadd.f32 %v1745_v44, %v726_v27  ;;  %777 = vst.msk [vmem:[%s1753_s12 + $0x178] sm:$0xff] %vm729_vm1, %v2367_v30 }
 0x153   : > { %976 = vrot.lane.b32.xlu2 %v2192_v11, %s1605_s14  ;;  %944 = vrot.lane.b32.xlu1 %v2189_v10, %s1605_s14  ;;  %793 = vst.msk [vmem:[%s1753_s12 + $0x1f8] sm:$0xff] %vm729_vm1, %v2370_v33 }
 0x154   : > { %1136 = vrot.lane.b32.xlu0 %v2167_v0, %s1604_s13 }
 0x155   : > { %v1159_v51 = vpop.permute.xlu2 %1158  ;;  %v963_v52 = vpop.permute.xlu1 %962 }
 0x156   : > { %1328 = vst.msk [vmem:[%s1998_s17 + $0xb0] sm:$0xff] %vm729_vm1, %v1159_v51  ;;  %v931_v56 = vpop.permute.xlu0 %930 }
 0x157   : > { %1102 = vst.msk [vmem:[%s2026_s21 + $0x1a0] sm:$0xff] %vm729_vm1, %v963_v52 }
 0x158   : > { %1086 = vst.msk [vmem:[%s2026_s21 + $0x120] sm:$0xff] %vm729_vm1, %v931_v56 }
 0x15b   : > { %1170 = vrot.lane.b32.xlu2 %v622_v22, %s1604_s13  ;;  %914 = vrot.lane.b32.xlu1 %v622_v22, %s1605_s14  ;;  %v631_v22 = vadd.f32 %v1745_v44, %v630_v16 }
 0x15c   : > { %882 = vrot.lane.b32.xlu0 %v2213_v17, %s1605_s14 }
 0x15d   : > { %v935_v0 = vpop.permute.xlu2 %934  ;;  %v1157_v1 = vpop.permute.xlu1 %1156  ;;  %761 = vst.msk [vmem:[%s1753_s12 + $0xf8] sm:$0xff] %vm729_vm1, %v631_v22 }
 0x15e   : > { %1088 = vst.msk [vmem:[%s2026_s21 + $0x130] sm:$0xff] %vm729_vm1, %v935_v0  ;;  %v901_v2 = vpop.permute.xlu0 %900 }
 0x15f   : > { %1327 = vst.msk [vmem:[%s1998_s17 + $0xa8] sm:$0xff] %vm729_vm1, %v1157_v1 }
 0x160   : > { %1071 = vst.msk [vmem:[%s2026_s21 + $0xa8] sm:$0xff] %vm729_vm1, %v901_v2 }
 0x163   : > { %946 = vrot.lane.b32.xlu2 %v2234_v28, %s1605_s14  ;;  %1138 = vrot.lane.b32.xlu1 %v2213_v17, %s1604_s13  ;;  %v583_v17 = vadd.f32 %v1745_v44, %v582_v15 }
 0x164   : > { %978 = vrot.lane.b32.xlu0 %v2237_v29, %s1605_s14 }
 0x165   : > { %v905_v12 = vpop.permute.xlu2 %904  ;;  %v933_v13 = vpop.permute.xlu1 %932  ;;  %745 = vst.msk [vmem:[%s1753_s12 + $0x78] sm:$0xff] %vm729_vm1, %v583_v17 }
 0x166   : > { %1073 = vst.msk [vmem:[%s2026_s21 + $0xb8] sm:$0xff] %vm729_vm1, %v905_v12  ;;  %v1125_v14 = vpop.permute.xlu0 %1124 }
 0x167   : > { %1087 = vst.msk [vmem:[%s2026_s21 + $0x128] sm:$0xff] %vm729_vm1, %v933_v13 }
 0x168   : > { %1311 = vst.msk [vmem:[%s1998_s17 + $0x28] sm:$0xff] %vm729_vm1, %v1125_v14 }
 0x16b   : > { %916 = vrot.lane.b32.xlu2 %v2261_v40, %s1605_s14  ;;  %884 = vrot.lane.b32.xlu1 %v2258_v39, %s1605_s14 }
 0x16c   : > { %1172 = vrot.lane.b32.xlu0 %v2261_v40, %s1604_s13 }
 0x16d   : > { %v1129_v23 = vpop.permute.xlu2 %1128  ;;  %v903_v24 = vpop.permute.xlu1 %902 }
 0x16e   : > { %1313 = vst.msk [vmem:[%s1998_s17 + $0x38] sm:$0xff] %vm729_vm1, %v1129_v23  ;;  %v871_v25 = vpop.permute.xlu0 %870 }
 0x16f   : > { %1072 = vst.msk [vmem:[%s2026_s21 + $0xb0] sm:$0xff] %vm729_vm1, %v903_v24 }
 0x170   : > { %1056 = vst.msk [vmem:[%s2026_s21 + $0x30] sm:$0xff] %vm729_vm1, %v871_v25 }
 0x173   : > { %1140 = vrot.lane.b32.xlu2 %v2258_v39, %s1604_s13  ;;  %980 = vrot.lane.b32.xlu1 %v2285_v50, %s1605_s14 }
 0x174   : > { %948 = vrot.lane.b32.xlu0 %v2282_v49, %s1605_s14 }
 0x175   : > { %v875_v44 = vpop.permute.xlu2 %874  ;;  %v1127_v34 = vpop.permute.xlu1 %1126 }
 0x176   : > { %1058 = vst.msk [vmem:[%s2026_s21 + $0x40] sm:$0xff] %vm729_vm1, %v875_v44  ;;  %v967_v35 = vpop.permute.xlu0 %966 }
 0x177   : > { %1312 = vst.msk [vmem:[%s1998_s17 + $0x30] sm:$0xff] %vm729_vm1, %v1127_v34 }
 0x178   : > { %1104 = vst.msk [vmem:[%s2026_s21 + $0x1b0] sm:$0xff] %vm729_vm1, %v967_v35 }
 0x17b   : > { %886 = vrot.lane.b32.xlu2 %v2306_v61, %s1605_s14  ;;  %1174 = vrot.lane.b32.xlu1 %v628_v62, %s1604_s13 }
 0x17c   : > { %918 = vrot.lane.b32.xlu0 %v628_v62, %s1605_s14 }
 0x17d   : > { %v971_v38 = vpop.permute.xlu2 %970  ;;  %v873_v39 = vpop.permute.xlu1 %872 }
 0x17e   : > { %1106 = vst.msk [vmem:[%s2026_s21 + $0x1c0] sm:$0xff] %vm729_vm1, %v971_v38  ;;  %v1161_v40 = vpop.permute.xlu0 %1160 }
 0x17f   : > { %1057 = vst.msk [vmem:[%s2026_s21 + $0x38] sm:$0xff] %vm729_vm1, %v873_v39 }
 0x180   : > { %1329 = vst.msk [vmem:[%s1998_s17 + $0xb8] sm:$0xff] %vm729_vm1, %v1161_v40 }
 0x183   : > { %982 = vrot.lane.b32.xlu2 %v2328_v6, %s1605_s14  ;;  %950 = vrot.lane.b32.xlu1 %v2325_v5, %s1605_s14 }
 0x184   : > { %1142 = vrot.lane.b32.xlu0 %v2306_v61, %s1604_s13 }
 0x185   : > { %v1165_v41 = vpop.permute.xlu2 %1164  ;;  %v969_v42 = vpop.permute.xlu1 %968 }
 0x186   : > { %1331 = vst.msk [vmem:[%s1998_s17 + $0xc8] sm:$0xff] %vm729_vm1, %v1165_v41  ;;  %v937_v46 = vpop.permute.xlu0 %936 }
 0x187   : > { %1105 = vst.msk [vmem:[%s2026_s21 + $0x1b8] sm:$0xff] %vm729_vm1, %v969_v42 }
 0x188   : > { %1089 = vst.msk [vmem:[%s2026_s21 + $0x138] sm:$0xff] %vm729_vm1, %v937_v46 }
 0x18b   : > { %1176 = vrot.lane.b32.xlu2 %v631_v22, %s1604_s13  ;;  %920 = vrot.lane.b32.xlu1 %v631_v22, %s1605_s14 }
 0x18c   : > { %888 = vrot.lane.b32.xlu0 %v583_v17, %s1605_s14 }
 0x18d   : > { %v941_v47 = vpop.permute.xlu2 %940  ;;  %v1163_v48 = vpop.permute.xlu1 %1162 }
 0x18e   : > { %1091 = vst.msk [vmem:[%s2026_s21 + $0x148] sm:$0xff] %vm729_vm1, %v941_v47  ;;  %v907_v51 = vpop.permute.xlu0 %906 }
 0x18f   : > { %1330 = vst.msk [vmem:[%s1998_s17 + $0xc0] sm:$0xff] %vm729_vm1, %v1163_v48 }
 0x190   : > { %1074 = vst.msk [vmem:[%s2026_s21 + $0xc0] sm:$0xff] %vm729_vm1, %v907_v51 }
 0x193   : > { %952 = vrot.lane.b32.xlu2 %v2367_v30, %s1605_s14  ;;  %1144 = vrot.lane.b32.xlu1 %v583_v17, %s1604_s13 }
 0x194   : > { %984 = vrot.lane.b32.xlu0 %v2370_v33, %s1605_s14 }
 0x195   : > { %v911_v52 = vpop.permute.xlu2 %910  ;;  %v939_v56 = vpop.permute.xlu1 %938 }
 0x196   : > { %1076 = vst.msk [vmem:[%s2026_s21 + $0xd0] sm:$0xff] %vm729_vm1, %v911_v52  ;;  %v1131_v59 = vpop.permute.xlu0 %1130 }
 0x197   : > { %1090 = vst.msk [vmem:[%s2026_s21 + $0x140] sm:$0xff] %vm729_vm1, %v939_v56 }
 0x198   : > { %1314 = vst.msk [vmem:[%s1998_s17 + $0x40] sm:$0xff] %vm729_vm1, %v1131_v59 }
 0x19b   : > { %1188 = vrot.lane.b32.xlu2 %v1927_v43, %s1604_s13  ;;  %1186 = vrot.lane.b32.xlu1 %v1887_v31, %s1604_s13 }
 0x19c   : > { %1184 = vrot.lane.b32.xlu0 %v1849_v19, %s1604_s13 }
 0x19d   : > { %v1135_v60 = vpop.permute.xlu2 %1134  ;;  %v909_v61 = vpop.permute.xlu1 %908 }
 0x19e   : > { %1316 = vst.msk [vmem:[%s1998_s17 + $0x50] sm:$0xff] %vm729_vm1, %v1135_v60  ;;  %v877_v62 = vpop.permute.xlu0 %876 }
 0x19f   : > { %1075 = vst.msk [vmem:[%s2026_s21 + $0xc8] sm:$0xff] %vm729_vm1, %v909_v61 }
 0x1a0   : > { %1059 = vst.msk [vmem:[%s2026_s21 + $0x48] sm:$0xff] %vm729_vm1, %v877_v62 }
 0x1a3   : > { %1194 = vrot.lane.b32.xlu2 %v2054_v18, %s1604_s13  ;;  %1192 = vrot.lane.b32.xlu1 %v2013_v7, %s1604_s13 }
 0x1a4   : > { %1190 = vrot.lane.b32.xlu0 %v1966_v57, %s1604_s13 }
 0x1a5   : > { %v881_v19 = vpop.permute.xlu2 %880  ;;  %v1133_v31 = vpop.permute.xlu1 %1132 }
 0x1a6   : > { %1061 = vst.msk [vmem:[%s2026_s21 + $0x58] sm:$0xff] %vm729_vm1, %v881_v19  ;;  %v973_v43 = vpop.permute.xlu0 %972 }
 0x1a7   : > { %1315 = vst.msk [vmem:[%s1998_s17 + $0x48] sm:$0xff] %vm729_vm1, %v1133_v31 }
 0x1a8   : > { %1107 = vst.msk [vmem:[%s2026_s21 + $0x1c8] sm:$0xff] %vm729_vm1, %v973_v43 }
 0x1ab   : > { %1200 = vrot.lane.b32.xlu2 %v2189_v10, %s1604_s13  ;;  %1198 = vrot.lane.b32.xlu1 %v2143_v53, %s1604_s13 }
 0x1ac   : > { %1196 = vrot.lane.b32.xlu0 %v2097_v36, %s1604_s13 }
 0x1ad   : > { %v977_v57 = vpop.permute.xlu2 %976  ;;  %v879_v7 = vpop.permute.xlu1 %878 }
 0x1ae   : > { %1109 = vst.msk [vmem:[%s2026_s21 + $0x1d8] sm:$0xff] %vm729_vm1, %v977_v57  ;;  %v1167_v18 = vpop.permute.xlu0 %1166 }
 0x1af   : > { %1060 = vst.msk [vmem:[%s2026_s21 + $0x50] sm:$0xff] %vm729_vm1, %v879_v7 }
 0x1b0   : > { %1332 = vst.msk [vmem:[%s1998_s17 + $0xd0] sm:$0xff] %vm729_vm1, %v1167_v18 }
 0x1b3   : > { %1206 = vrot.lane.b32.xlu2 %v2325_v5, %s1604_s13  ;;  %1204 = vrot.lane.b32.xlu1 %v2282_v49, %s1604_s13 }
 0x1b4   : > { %1202 = vrot.lane.b32.xlu0 %v2234_v28, %s1604_s13 }
 0x1b5   : > { %v1171_v36 = vpop.permute.xlu2 %1170  ;;  %v975_v53 = vpop.permute.xlu1 %974 }
 0x1b6   : > { %1334 = vst.msk [vmem:[%s1998_s17 + $0xe0] sm:$0xff] %vm729_vm1, %v1171_v36  ;;  %v943_v10 = vpop.permute.xlu0 %942 }
 0x1b7   : > { %1108 = vst.msk [vmem:[%s2026_s21 + $0x1d0] sm:$0xff] %vm729_vm1, %v975_v53 }
 0x1b8   : > { %1092 = vst.msk [vmem:[%s2026_s21 + $0x150] sm:$0xff] %vm729_vm1, %v943_v10 }
 0x1bb   : > { %1212 = vrot.lane.b32.xlu2 %v1792_v63, %s1604_s13  ;;  %1210 = vrot.lane.b32.xlu1 %v1770_v54, %s1604_s13 }
 0x1bc   : > { %1208 = vrot.lane.b32.xlu0 %v2367_v30, %s1604_s13 }
 0x1bd   : > { %v947_v28 = vpop.permute.xlu2 %946  ;;  %v1169_v49 = vpop.permute.xlu1 %1168 }
 0x1be   : > { %1094 = vst.msk [vmem:[%s2026_s21 + $0x160] sm:$0xff] %vm729_vm1, %v947_v28  ;;  %v913_v0 = vpop.permute.xlu0 %912 }
 0x1bf   : > { %1333 = vst.msk [vmem:[%s1998_s17 + $0xd8] sm:$0xff] %vm729_vm1, %v1169_v49 }
 0x1c0   : > { %1077 = vst.msk [vmem:[%s2026_s21 + $0xd8] sm:$0xff] %vm729_vm1, %v913_v0 }
 0x1c3   : > { %1218 = vrot.lane.b32.xlu2 %v1890_v32, %s1604_s13  ;;  %1216 = vrot.lane.b32.xlu1 %v1852_v21, %s1604_s13 }
 0x1c4   : > { %1214 = vrot.lane.b32.xlu0 %v1821_v9, %s1604_s13 }
 0x1c5   : > { %v917_v54 = vpop.permute.xlu2 %916  ;;  %v945_v63 = vpop.permute.xlu1 %944 }
 0x1c6   : > { %1079 = vst.msk [vmem:[%s2026_s21 + $0xe8] sm:$0xff] %vm729_vm1, %v917_v54  ;;  %v1137_v1 = vpop.permute.xlu0 %1136 }
 0x1c7   : > { %1093 = vst.msk [vmem:[%s2026_s21 + $0x158] sm:$0xff] %vm729_vm1, %v945_v63 }
 0x1c8   : > { %1317 = vst.msk [vmem:[%s1998_s17 + $0x58] sm:$0xff] %vm729_vm1, %v1137_v1 }
 0x1cb   : > { %1224 = vrot.lane.b32.xlu2 %v2016_v8, %s1604_s13  ;;  %1222 = vrot.lane.b32.xlu1 %v1969_v58, %s1604_s13 }
 0x1cc   : > { %1220 = vrot.lane.b32.xlu0 %v1930_v45, %s1604_s13 }
 0x1cd   : > { %v1141_v9 = vpop.permute.xlu2 %1140  ;;  %v915_v21 = vpop.permute.xlu1 %914 }
 0x1ce   : > { %1319 = vst.msk [vmem:[%s1998_s17 + $0x68] sm:$0xff] %vm729_vm1, %v1141_v9  ;;  %v883_v32 = vpop.permute.xlu0 %882 }
 0x1cf   : > { %1078 = vst.msk [vmem:[%s2026_s21 + $0xe0] sm:$0xff] %vm729_vm1, %v915_v21 }
 0x1d0   : > { %1062 = vst.msk [vmem:[%s2026_s21 + $0x60] sm:$0xff] %vm729_vm1, %v883_v32 }
 0x1d3   : > { %1230 = vrot.lane.b32.xlu2 %v2146_v55, %s1604_s13  ;;  %1228 = vrot.lane.b32.xlu1 %v2100_v37, %s1604_s13 }
 0x1d4   : > { %1226 = vrot.lane.b32.xlu0 %v2057_v20, %s1604_s13 }
 0x1d5   : > { %v887_v45 = vpop.permute.xlu2 %886  ;;  %v1139_v58 = vpop.permute.xlu1 %1138 }
 0x1d6   : > { %1064 = vst.msk [vmem:[%s2026_s21 + $0x70] sm:$0xff] %vm729_vm1, %v887_v45  ;;  %v979_v8 = vpop.permute.xlu0 %978 }
 0x1d7   : > { %1318 = vst.msk [vmem:[%s1998_s17 + $0x60] sm:$0xff] %vm729_vm1, %v1139_v58 }
 0x1d8   : > { %1110 = vst.msk [vmem:[%s2026_s21 + $0x1e0] sm:$0xff] %vm729_vm1, %v979_v8 }
 0x1db   : > { %1236 = vrot.lane.b32.xlu2 %v2285_v50, %s1604_s13  ;;  %1234 = vrot.lane.b32.xlu1 %v2237_v29, %s1604_s13 }
 0x1dc   : > { %1232 = vrot.lane.b32.xlu0 %v2192_v11, %s1604_s13 }
 0x1dd   : > { %v983_v20 = vpop.permute.xlu2 %982  ;;  %v885_v37 = vpop.permute.xlu1 %884 }
 0x1de   : > { %1112 = vst.msk [vmem:[%s2026_s21 + $0x1f0] sm:$0xff] %vm729_vm1, %v983_v20  ;;  %v1173_v55 = vpop.permute.xlu0 %1172 }
 0x1df   : > { %1063 = vst.msk [vmem:[%s2026_s21 + $0x68] sm:$0xff] %vm729_vm1, %v885_v37 }
 0x1e0   : > { %1335 = vst.msk [vmem:[%s1998_s17 + $0xe8] sm:$0xff] %vm729_vm1, %v1173_v55 }
 0x1e3   : > { %1240 = vrot.lane.b32.xlu1 %v2370_v33, %s1604_s13 }
 0x1e4   : > { %1238 = vrot.lane.b32.xlu0 %v2328_v6, %s1604_s13 }
 0x1e5   : > { %v1177_v11 = vpop.permute.xlu2 %1176  ;;  %v981_v29 = vpop.permute.xlu1 %980 }
 0x1e6   : > { %1337 = vst.msk [vmem:[%s1998_s17 + $0xf8] sm:$0xff] %vm729_vm1, %v1177_v11  ;;  %v949_v50 = vpop.permute.xlu0 %948 }
 0x1e7   : > { %1111 = vst.msk [vmem:[%s2026_s21 + $0x1e8] sm:$0xff] %vm729_vm1, %v981_v29 }
 0x1e8   : > { %1095 = vst.msk [vmem:[%s2026_s21 + $0x168] sm:$0xff] %vm729_vm1, %v949_v50 }
 0x1ed   : > { %v953_v2 = vpop.permute.xlu2 %952  ;;  %v1175_v3 = vpop.permute.xlu1 %1174 }
 0x1ee   : > { %1097 = vst.msk [vmem:[%s2026_s21 + $0x178] sm:$0xff] %vm729_vm1, %v953_v2  ;;  %v919_v4 = vpop.permute.xlu0 %918 }
 0x1ef   : > { %1336 = vst.msk [vmem:[%s1998_s17 + $0xf0] sm:$0xff] %vm729_vm1, %v1175_v3 }
 0x1f0   : > { %1080 = vst.msk [vmem:[%s2026_s21 + $0xf0] sm:$0xff] %vm729_vm1, %v919_v4 }
 0x1f5   : > { %v1189_v5 = vpop.permute.xlu2 %1188  ;;  %v951_v6 = vpop.permute.xlu1 %950 }
 0x1f6   : > { %1343 = vst.msk [vmem:[%s1998_s17 + $0x128] sm:$0xff] %vm729_vm1, %v1189_v5  ;;  %v1143_v12 = vpop.permute.xlu0 %1142 }
 0x1f7   : > { %1096 = vst.msk [vmem:[%s2026_s21 + $0x170] sm:$0xff] %vm729_vm1, %v951_v6 }
 0x1f8   : > { %1320 = vst.msk [vmem:[%s1998_s17 + $0x70] sm:$0xff] %vm729_vm1, %v1143_v12 }
 0x1fd   : > { %v1195_v13 = vpop.permute.xlu2 %1194  ;;  %v921_v14 = vpop.permute.xlu1 %920 }
 0x1fe   : > { %1346 = vst.msk [vmem:[%s1998_s17 + $0x140] sm:$0xff] %vm729_vm1, %v1195_v13  ;;  %v889_v15 = vpop.permute.xlu0 %888 }
 0x1ff   : > { %1081 = vst.msk [vmem:[%s2026_s21 + $0xf8] sm:$0xff] %vm729_vm1, %v921_v14 }
 0x200   : > { %1065 = vst.msk [vmem:[%s2026_s21 + $0x78] sm:$0xff] %vm729_vm1, %v889_v15 }
 0x205   : > { %v1201_v16 = vpop.permute.xlu2 %1200  ;;  %v1145_v17 = vpop.permute.xlu1 %1144 }
 0x206   : > { %1349 = vst.msk [vmem:[%s1998_s17 + $0x158] sm:$0xff] %vm729_vm1, %v1201_v16  ;;  %v985_v22 = vpop.permute.xlu0 %984 }
 0x207   : > { %1321 = vst.msk [vmem:[%s1998_s17 + $0x78] sm:$0xff] %vm729_vm1, %v1145_v17 }
 0x208   : > { %1113 = vst.msk [vmem:[%s2026_s21 + $0x1f8] sm:$0xff] %vm729_vm1, %v985_v22 }
 0x20d   : > { %v1207_v23 = vpop.permute.xlu2 %1206  ;;  %v1187_v24 = vpop.permute.xlu1 %1186 }
 0x20e   : > { %1352 = vst.msk [vmem:[%s1998_s17 + $0x170] sm:$0xff] %vm729_vm1, %v1207_v23  ;;  %v1185_v25 = vpop.permute.xlu0 %1184 }
 0x20f   : > { %1342 = vst.msk [vmem:[%s1998_s17 + $0x120] sm:$0xff] %vm729_vm1, %v1187_v24 }
 0x210   : > { %1341 = vst.msk [vmem:[%s1998_s17 + $0x118] sm:$0xff] %vm729_vm1, %v1185_v25 }
 0x215   : > { %v1213_v26 = vpop.permute.xlu2 %1212  ;;  %v1193_v27 = vpop.permute.xlu1 %1192 }
 0x216   : > { %1355 = vst.msk [vmem:[%s1998_s17 + $0x188] sm:$0xff] %vm729_vm1, %v1213_v26  ;;  %v1191_v30 = vpop.permute.xlu0 %1190 }
 0x217   : > { %1345 = vst.msk [vmem:[%s1998_s17 + $0x138] sm:$0xff] %vm729_vm1, %v1193_v27 }
 0x218   : > { %1344 = vst.msk [vmem:[%s1998_s17 + $0x130] sm:$0xff] %vm729_vm1, %v1191_v30 }
 0x21d   : > { %v1219_v33 = vpop.permute.xlu2 %1218  ;;  %v1199_v44 = vpop.permute.xlu1 %1198 }
 0x21e   : > { %1358 = vst.msk [vmem:[%s1998_s17 + $0x1a0] sm:$0xff] %vm729_vm1, %v1219_v33  ;;  %v1197_v34 = vpop.permute.xlu0 %1196 }
 0x21f   : > { %1348 = vst.msk [vmem:[%s1998_s17 + $0x150] sm:$0xff] %vm729_vm1, %v1199_v44 }
 0x220   : > { %1347 = vst.msk [vmem:[%s1998_s17 + $0x148] sm:$0xff] %vm729_vm1, %v1197_v34 }
 0x225   : > { %v1225_v35 = vpop.permute.xlu2 %1224  ;;  %v1205_v38 = vpop.permute.xlu1 %1204 }
 0x226   : > { %1361 = vst.msk [vmem:[%s1998_s17 + $0x1b8] sm:$0xff] %vm729_vm1, %v1225_v35  ;;  %v1203_v39 = vpop.permute.xlu0 %1202 }
 0x227   : > { %1351 = vst.msk [vmem:[%s1998_s17 + $0x168] sm:$0xff] %vm729_vm1, %v1205_v38 }
 0x228   : > { %1350 = vst.msk [vmem:[%s1998_s17 + $0x160] sm:$0xff] %vm729_vm1, %v1203_v39 }
 0x22d   : > { %v1231_v40 = vpop.permute.xlu2 %1230  ;;  %v1211_v41 = vpop.permute.xlu1 %1210 }
 0x22e   : > { %1364 = vst.msk [vmem:[%s1998_s17 + $0x1d0] sm:$0xff] %vm729_vm1, %v1231_v40  ;;  %v1209_v42 = vpop.permute.xlu0 %1208 }
 0x22f   : > { %1354 = vst.msk [vmem:[%s1998_s17 + $0x180] sm:$0xff] %vm729_vm1, %v1211_v41 }
 0x230   : > { %1353 = vst.msk [vmem:[%s1998_s17 + $0x178] sm:$0xff] %vm729_vm1, %v1209_v42 }
 0x235   : > { %v1237_v46 = vpop.permute.xlu2 %1236  ;;  %v1217_v47 = vpop.permute.xlu1 %1216 }
 0x236   : > { %1367 = vst.msk [vmem:[%s1998_s17 + $0x1e8] sm:$0xff] %vm729_vm1, %v1237_v46  ;;  %v1215_v48 = vpop.permute.xlu0 %1214 }
 0x237   : > { %1357 = vst.msk [vmem:[%s1998_s17 + $0x198] sm:$0xff] %vm729_vm1, %v1217_v47 }
 0x238   : > { %1356 = vst.msk [vmem:[%s1998_s17 + $0x190] sm:$0xff] %vm729_vm1, %v1215_v48 }
 0x23d   : > { %v1223_v51 = vpop.permute.xlu1 %1222 }
 0x23e   : > { %1360 = vst.msk [vmem:[%s1998_s17 + $0x1b0] sm:$0xff] %vm729_vm1, %v1223_v51  ;;  %v1221_v52 = vpop.permute.xlu0 %1220 }
 0x23f   : > { %1359 = vst.msk [vmem:[%s1998_s17 + $0x1a8] sm:$0xff] %vm729_vm1, %v1221_v52 }
 0x245   : > { %v1229_v56 = vpop.permute.xlu1 %1228 }
 0x246   : > { %1363 = vst.msk [vmem:[%s1998_s17 + $0x1c8] sm:$0xff] %vm729_vm1, %v1229_v56  ;;  %v1227_v59 = vpop.permute.xlu0 %1226 }
 0x247   : > { %1362 = vst.msk [vmem:[%s1998_s17 + $0x1c0] sm:$0xff] %vm729_vm1, %v1227_v59 }
 0x24d   : > { %v1235_v60 = vpop.permute.xlu1 %1234 }
 0x24e   : > { %1366 = vst.msk [vmem:[%s1998_s17 + $0x1e0] sm:$0xff] %vm729_vm1, %v1235_v60  ;;  %v1233_v61 = vpop.permute.xlu0 %1232 }
 0x24f   : > { %1365 = vst.msk [vmem:[%s1998_s17 + $0x1d8] sm:$0xff] %vm729_vm1, %v1233_v61 }
 0x255   : > { %v1241_v62 = vpop.permute.xlu1 %1240 }
 0x256   : > { %1369 = vst.msk [vmem:[%s1998_s17 + $0x1f8] sm:$0xff] %vm729_vm1, %v1241_v62  ;;  %v1239_v19 = vpop.permute.xlu0 %1238 }
 0x257   : > { %1368 = vst.msk [vmem:[%s1998_s17 + $0x1f0] sm:$0xff] %vm729_vm1, %v1239_v19 }
 0x258 PF: > { %s16_s18 = sadd.s32 1, %s1602_s18  }
 0x259   : > { %p13_p4 = scmp.ge.s32.totalorder %s16_s18, 4  }
 0x25b   :  { %15 = sbr.rel (!%p13_p4) target bundleno = 1 (0x1), region = 86 }

</bundles_post_ra>
